<compile_context>
chip_gen: v5e
topology: v5e:2x2
jax: 0.10.0
libtpu: 0.0.40
codegen_flags: <defaults>
</compile_context>

<pallas_src>
import functools
import math

import jax
import jax.numpy as jnp
from jax import lax
from jax.experimental import pallas as pl
from jax.experimental.pallas import tpu as pltpu

NEG_INF = -1e30
LANE = 128


# --------------------------------------------------------------------------
# helpers
# --------------------------------------------------------------------------
def _compiler_params(dims):
    try:
        cap = pltpu.get_tpu_info().vmem_capacity_bytes
        vmem = int(min((cap * 3) // 4, 100 * 1024 * 1024))
    except Exception:
        # Conservative fallback that fits every generation (v7x has 64 MiB/core).
        vmem = 48 * 1024 * 1024
    return pltpu.CompilerParams(dimension_semantics=dims, vmem_limit_bytes=vmem)


def _round_up(n, m):
    return ((n + m - 1) // m) * m


def _pick_tile(n, preferred, multiple):
    """Largest tile <= preferred that divides n and is a multiple of `multiple`;
    falls back to the full dimension (always legal for the TPU tiling rule)."""
    if n <= preferred:
        return n
    t = (preferred // multiple) * multiple
    while t >= multiple:
        if n % t == 0:
            return t
        t -= multiple
    return n


def _layernorm_f32(v, w_row, b_row, eps=1e-5):
    """PyTorch LayerNorm over the last dim, computed in float32."""
    v32 = v.astype(jnp.float32)
    mu = jnp.mean(v32, axis=-1, keepdims=True)
    c = v32 - mu
    var = jnp.mean(c * c, axis=-1, keepdims=True)
    return c * lax.rsqrt(var + eps) * w_row + b_row


def _erf_poly(v):
    # Abramowitz & Stegun 7.1.26 (max abs error 1.5e-7, << bf16 resolution).
    # Used instead of lax.erf so the GELU lowers on every Mosaic generation.
    p = 0.3275911
    a1, a2, a3, a4, a5 = (0.254829592, -0.284496736, 1.421413741,
                          -1.453152027, 1.061405429)
    a = jnp.abs(v)
    t = 1.0 / (1.0 + p * a)
    poly = ((((a5 * t + a4) * t + a3) * t + a2) * t + a1) * t
    y = 1.0 - poly * jnp.exp(-(a * a))
    return jnp.where(v >= 0.0, y, -y)


def _gelu_exact(v):
    # nn.GELU() default: exact erf formulation (via the polynomial above).
    return 0.5 * v * (1.0 + _erf_poly(v * (1.0 / math.sqrt(2.0))))


# --------------------------------------------------------------------------
# Parameter preparation (one-time, host/XLA side):
#   * fold the attention scale 1/sqrt(head_dim) into wq/bq
#   * store matmul weights in the MXU compute dtype (bf16 by default)
#   * keep biases / LayerNorm params in f32 (applied to f32 accumulators)
# --------------------------------------------------------------------------
def prepare_params(params, n_head, compute_dtype=jnp.bfloat16):
    D = params["wq"].shape[0]
    hd = D // n_head
    scale = 1.0 / math.sqrt(hd)   # == hd**-0.25 applied to both q and k
    p = dict(params)
    p["wq"] = params["wq"] * scale
    p["bq"] = params["bq"] * scale
    for name in ("wq", "wk", "wv", "wo", "w1", "w2"):
        p[name] = p[name].astype(compute_dtype)
    for name in ("bq", "bv", "bo", "b1", "b2",
                 "ln1_w", "ln1_b", "ln2_w", "ln2_b"):
        p[name] = p[name].astype(jnp.float32)
    return p


# --------------------------------------------------------------------------
# Kernel A: LayerNorm1 + QKV projection over (B*T_pad, D) row tiles
# --------------------------------------------------------------------------
def _ln_qkv_kernel(x_ref, ln1w_ref, ln1b_ref, wq_ref, bq_ref, wk_ref,
                   wv_ref, bv_ref, q_ref, k_ref, v_ref):
    h = _layernorm_f32(x_ref[...], ln1w_ref[...], ln1b_ref[...])
    h = h.astype(wq_ref.dtype)                                    # bf16 for the MXU
    q_ref[...] = (jnp.dot(h, wq_ref[...], preferred_element_type=jnp.float32)
                  + bq_ref[...]).astype(q_ref.dtype)
    k_ref[...] = jnp.dot(h, wk_ref[...],
                         preferred_element_type=jnp.float32).astype(k_ref.dtype)
    v_ref[...] = (jnp.dot(h, wv_ref[...], preferred_element_type=jnp.float32)
                  + bv_ref[...]).astype(v_ref.dtype)


def _ln_qkv(x_rows, params, tr, compute_dtype):
    NR, D = x_rows.shape
    row_spec = pl.BlockSpec((tr, D), lambda r: (r, 0))
    const = lambda shape: pl.BlockSpec(shape, lambda r: (0, 0))
    out_sd = jax.ShapeDtypeStruct((NR, D), compute_dtype)
    return pl.pallas_call(
        _ln_qkv_kernel,
        grid=(NR // tr,),
        in_specs=[row_spec,
                  const((1, D)), const((1, D)),
                  const((D, D)), const((1, D)),
                  const((D, D)),
                  const((D, D)), const((1, D))],
        out_specs=(row_spec, row_spec, row_spec),
        out_shape=(out_sd, out_sd, out_sd),
        compiler_params=_compiler_params(("parallel",)),
    )(x_rows, params["ln1_w"], params["ln1_b"], params["wq"], params["bq"],
      params["wk"], params["wv"], params["bv"])


# --------------------------------------------------------------------------
# Kernel B: flash attention (online softmax), HP heads packed per grid step
# --------------------------------------------------------------------------
def _flash_attn_kernel(tkv, t_valid, need_mask,
                       q_ref, k_ref, v_ref, o_ref, m_sc, l_sc, acc_sc):
    ki = pl.program_id(3)

    @pl.when(ki == 0)
    def _():
        m_sc[...] = jnp.full(m_sc.shape, NEG_INF, dtype=jnp.float32)
        l_sc[...] = jnp.zeros(l_sc.shape, dtype=jnp.float32)
        acc_sc[...] = jnp.zeros(acc_sc.shape, dtype=jnp.float32)

    q = q_ref[0]                                                  # (HP, tq, hd)
    k = k_ref[0]                                                  # (HP, tkv, hd)
    v = v_ref[0]                                                  # (HP, tkv, hd)

    # Scores for HP packed heads at once; scale is already folded into wq/bq.
    s = jnp.einsum("hqd,hkd->hqk", q, k,
                   preferred_element_type=jnp.float32)            # (HP, tq, tkv) f32
    if need_mask:                                                 # static Python branch
        col = ki * tkv + lax.broadcasted_iota(jnp.int32, s.shape, 2)
        s = jnp.where(col < t_valid, s, NEG_INF)

    m_prev = m_sc[...]
    m_new = jnp.maximum(m_prev, jnp.max(s, axis=-1, keepdims=True))
    alpha = jnp.exp(m_prev - m_new)
    p = jnp.exp(s - m_new)                                        # f32 probs

    l_sc[...] = alpha * l_sc[...] + jnp.sum(p, axis=-1, keepdims=True)
    acc_sc[...] = alpha * acc_sc[...] + jnp.einsum(
        "hqk,hkd->hqd", p.astype(v.dtype), v,
        preferred_element_type=jnp.float32)
    m_sc[...] = m_new

    @pl.when(ki == pl.num_programs(3) - 1)
    def _():
        inv_l = pl.reciprocal(l_sc[...], approx=True)             # EUP slot
        o_ref[0] = (acc_sc[...] * inv_l).astype(o_ref.dtype)


def _flash_attention(qh, kh, vh, hp, tq, tkv, t_valid):
    B, H, T_pad, hd = qh.shape
    need_mask = t_valid < T_pad
    q_spec = pl.BlockSpec((1, hp, tq, hd), lambda b, g, qi, ki: (b, g, qi, 0))
    kv_spec = pl.BlockSpec((1, hp, tkv, hd), lambda b, g, qi, ki: (b, g, ki, 0))
    return pl.pallas_call(
        functools.partial(_flash_attn_kernel, tkv, t_valid, need_mask),
        grid=(B, H // hp, T_pad // tq, T_pad // tkv),
        in_specs=[q_spec, kv_spec, kv_spec],
        out_specs=q_spec,
        out_shape=jax.ShapeDtypeStruct((B, H, T_pad, hd), qh.dtype),
        scratch_shapes=[pltpu.VMEM((hp, tq, 1), jnp.float32),
                        pltpu.VMEM((hp, tq, 1), jnp.float32),
                        pltpu.VMEM((hp, tq, hd), jnp.float32)],
        compiler_params=_compiler_params(
            ("parallel", "parallel", "parallel", "arbitrary")),
    )(qh, kh, vh)


# --------------------------------------------------------------------------
# Kernel C: out-projection + residual + LayerNorm2 + MLP (streamed 4*D) + residual
# --------------------------------------------------------------------------
def _out_mlp_kernel(x_ref, wv_ref, wo_ref, bo_ref, ln2w_ref, ln2b_ref,
                    w1_ref, b1_ref, w2_ref, b2_ref, o_ref, x1_sc, h2_sc):
    f = pl.program_id(1)

    @pl.when(f == 0)
    def _():
        attn = (jnp.dot(wv_ref[...], wo_ref[...],
                        preferred_element_type=jnp.float32) + bo_ref[...])
        x1 = x_ref[...].astype(jnp.float32) + attn                # residual 1
        x1_sc[...] = x1                                           # doubles as MLP accumulator
        h2_sc[...] = _layernorm_f32(x1, ln2w_ref[...],
                                    ln2b_ref[...]).astype(h2_sc.dtype)

    # One tf-wide chunk of the 4*D hidden dimension per grid step.
    g = (jnp.dot(h2_sc[...], w1_ref[...], preferred_element_type=jnp.float32)
         + b1_ref[...])
    g = _gelu_exact(g).astype(w2_ref.dtype)
    x1_sc[...] += jnp.dot(g, w2_ref[...], preferred_element_type=jnp.float32)

    @pl.when(f == pl.num_programs(1) - 1)
    def _():
        o_ref[...] = (x1_sc[...] + b2_ref[...]).astype(o_ref.dtype)


def _out_proj_mlp(x_rows, wv_rows, params, tr, tf, compute_dtype):
    NR, D = x_rows.shape
    n_mlp = params["w1"].shape[1]
    row_spec = pl.BlockSpec((tr, D), lambda r, f: (r, 0))
    const = lambda shape: pl.BlockSpec(shape, lambda r, f: (0, 0))
    return pl.pallas_call(
        _out_mlp_kernel,
        grid=(NR // tr, n_mlp // tf),
        in_specs=[row_spec, row_spec,
                  const((D, D)), const((1, D)),
                  const((1, D)), const((1, D)),
                  pl.BlockSpec((D, tf), lambda r, f: (0, f)),
                  pl.BlockSpec((1, tf), lambda r, f: (0, f)),
                  pl.BlockSpec((tf, D), lambda r, f: (f, 0)),
                  const((1, D))],
        out_specs=row_spec,
        out_shape=jax.ShapeDtypeStruct((NR, D), x_rows.dtype),
        scratch_shapes=[pltpu.VMEM((tr, D), jnp.float32),
                        pltpu.VMEM((tr, D), compute_dtype)],
        compiler_params=_compiler_params(("parallel", "arbitrary")),
    )(x_rows, wv_rows, params["wo"], params["bo"], params["ln2_w"],
      params["ln2_b"], params["w1"], params["b1"], params["w2"], params["b2"])


# --------------------------------------------------------------------------
# Full block
# --------------------------------------------------------------------------
def residual_attention_block(x, params, n_head, *,
                             tq=256, tkv=1024, tf=1024, rows=512):
    """Forward pass of ResidualAttentionBlock (self-attention only).

    `params` must come from prepare_params() (scale folded into wq/bq, matmul
    weights stored in the MXU compute dtype)."""
    B, T, D = x.shape
    assert D % n_head == 0
    hd = D // n_head
    n_mlp = params["w1"].shape[1]
    compute_dtype = params["wq"].dtype

    # Pad the sequence to a lane multiple so every q/kv tile is lane-dense and
    # the tile picker never degenerates to the full sequence (Whisper T=1500).
    T_pad = _round_up(T, LANE)
    if T_pad != T:
        x = jnp.pad(x, ((0, 0), (0, T_pad - T), (0, 0)))
    NR = B * T_pad

    tq = _pick_tile(T_pad, tq, LANE)
    tkv = _pick_tile(T_pad, tkv, LANE)    # padding < 128 <= tkv, so every KV tile
                                          # keeps at least one valid column
    tf = _pick_tile(n_mlp, tf, LANE)
    tr = _pick_tile(NR, rows, LANE)

    # Pack as many heads as fit in 128 lanes into one flash grid step.
    hp = 1
    for cand in (8, 4, 2):
        if n_head % cand == 0 and cand * hd <= LANE:
            hp = cand
            break

    x_rows = x.reshape(NR, D)

    # A) LayerNorm1 + QKV projection over row tiles.
    q, k, v = _ln_qkv(x_rows, params, tr, compute_dtype)

    # Head-major layout plumbing (plain XLA transposes).
    # TODO(synk): remove these by writing q/k/v head-major from kernel A or by
    # fusing the out-projection into the flash epilogue.
    def to_heads(a):
        return a.reshape(B, T_pad, n_head, hd).transpose(0, 2, 1, 3)

    # B) flash attention over (batch, head-groups, q-tiles, kv-tiles).
    o_heads = _flash_attention(to_heads(q), to_heads(k), to_heads(v),
                               hp, tq, tkv, T)
    wv_rows = o_heads.transpose(0, 2, 1, 3).reshape(NR, D)

    # C) out-projection + residual + LN2 + MLP (streamed over 4*D) + residual.
    out_rows = _out_proj_mlp(x_rows, wv_rows, params, tr, tf, compute_dtype)
    out = out_rows.reshape(B, T_pad, D)
    return out[:, :T, :] if T_pad != T else out


# --------------------------------------------------------------------------
# pure-JAX reference (mirrors the PyTorch module in f32)
# --------------------------------------------------------------------------
def reference_block(x, params, n_head):
    B, T, D = x.shape
    hd = D // n_head
    scale = float(hd) ** (-0.25)

    def ln(v, w, b):
        v = v.astype(jnp.float32)
        mu = v.mean(-1, keepdims=True)
        var = ((v - mu) ** 2).mean(-1, keepdims=True)
        return (v - mu) / jnp.sqrt(var + 1e-5) * w[0] + b[0]

    h = ln(x, params["ln1_w"], params["ln1_b"]).astype(x.dtype)
    q = h @ params["wq"] + params["bq"][0]
    k = h @ params["wk"]
    v = h @ params["wv"] + params["bv"][0]

    qh = q.reshape(B, T, n_head, hd).transpose(0, 2, 1, 3) * scale
    kh = k.reshape(B, T, n_head, hd).transpose(0, 2, 3, 1) * scale
    vh = v.reshape(B, T, n_head, hd).transpose(0, 2, 1, 3)
    qk = jnp.einsum("bhtd,bhds->bhts", qh, kh)
    w = jax.nn.softmax(qk.astype(jnp.float32), axis=-1).astype(x.dtype)
    wv = jnp.einsum("bhts,bhsd->bhtd", w, vh).transpose(0, 2, 1, 3).reshape(B, T, D)
    attn = wv @ params["wo"] + params["bo"][0]
    x1 = x + attn

    h2 = ln(x1, params["ln2_w"], params["ln2_b"]).astype(x.dtype)
    g = h2 @ params["w1"] + params["b1"][0]
    g = 0.5 * g * (1.0 + lax.erf(g / math.sqrt(2.0)))
    return x1 + (g @ params["w2"] + params["b2"][0])


# --------------------------------------------------------------------------
# main
# --------------------------------------------------------------------------
if __name__ == "__main__":
    B, T, D, H = 2, 8, 32, 4
    n_mlp = 4 * D

    key = jax.random.PRNGKey(0)
    keys = jax.random.split(key, 16)

    def nrm(k, shape, s=0.05):
        return jax.random.normal(k, shape, dtype=jnp.float32) * s

    params = {
        "ln1_w": nrm(keys[0], (1, D)) + 1.0,
        "ln1_b": nrm(keys[1], (1, D)),
        "wq": nrm(keys[2], (D, D)),
        "bq": nrm(keys[3], (1, D)),
        "wk": nrm(keys[4], (D, D)),
        "wv": nrm(keys[5], (D, D)),
        "bv": nrm(keys[6], (1, D)),
        "wo": nrm(keys[7], (D, D)),
        "bo": nrm(keys[8], (1, D)),
        "ln2_w": nrm(keys[9], (1, D)) + 1.0,
        "ln2_b": nrm(keys[10], (1, D)),
        "w1": nrm(keys[11], (D, n_mlp)),
        "b1": nrm(keys[12], (1, n_mlp)),
        "w2": nrm(keys[13], (n_mlp, D)),
        "b2": nrm(keys[14], (1, D)),
    }
    x = jax.random.normal(keys[15], (B, T, D), dtype=jnp.float32)

    ref = jax.block_until_ready(reference_block(x, params, H))

    # f32 compute path: tracks the f32 reference closely (only deltas are
    # pl.reciprocal(approx=True), the erf polynomial, online-softmax reassociation).
    p32 = prepare_params(params, H, compute_dtype=jnp.float32)
    out32 = jax.block_until_ready(residual_attention_block(x, p32, H))
    assert out32.shape == (B, T, D) and out32.dtype == x.dtype
    err32 = float(jnp.max(jnp.abs(out32 - ref)))
    assert jnp.allclose(out32, ref, atol=2e-3, rtol=2e-3), f"f32 max abs diff {err32}"

    # bf16 MXU path (the fast configuration): looser tolerance covers bf16 rounding.
    p16 = prepare_params(params, H)  # compute_dtype=bf16
    out16 = jax.block_until_ready(residual_attention_block(x, p16, H))
    assert out16.shape == (B, T, D) and out16.dtype == x.dtype
    err16 = float(jnp.max(jnp.abs(out16 - ref)))
    assert jnp.allclose(out16, ref, atol=3e-2, rtol=3e-2), f"bf16 max abs diff {err16}"

    print("KERNEL_OK")
</pallas_src>

<mosaic_0001>
module attributes {stable_mosaic.version = 11 : i64} {
  func.func @_ln_qkv_kernel(%arg0: i32, %arg1: memref<256x32xf32, #tpu.memory_space<vmem>>, %arg2: memref<1x32xf32, #tpu.memory_space<vmem>>, %arg3: memref<1x32xf32, #tpu.memory_space<vmem>>, %arg4: memref<32x32xf32, #tpu.memory_space<vmem>>, %arg5: memref<1x32xf32, #tpu.memory_space<vmem>>, %arg6: memref<32x32xf32, #tpu.memory_space<vmem>>, %arg7: memref<32x32xf32, #tpu.memory_space<vmem>>, %arg8: memref<1x32xf32, #tpu.memory_space<vmem>>, %arg9: memref<256x32xf32, #tpu.memory_space<vmem>>, %arg10: memref<256x32xf32, #tpu.memory_space<vmem>>, %arg11: memref<256x32xf32, #tpu.memory_space<vmem>>) attributes {dimension_semantics = [#tpu.dimension_semantics<parallel>], iteration_bounds = array<i64: 1>, scalar_prefetch = 0 : i64, scratch_operands = 0 : i64, tpu.core_type = #tpu.core_type<tc>, window_params = [{transform_indices = @transform_0, window_bounds = array<i64: 256, 32>}, {pipeline_mode = #tpu.pipeline_mode<synchronous>, transform_indices = @transform_1, window_bounds = array<i64: 1, 32>}, {pipeline_mode = #tpu.pipeline_mode<synchronous>, transform_indices = @transform_2, window_bounds = array<i64: 1, 32>}, {pipeline_mode = #tpu.pipeline_mode<synchronous>, transform_indices = @transform_3, window_bounds = array<i64: 32, 32>}, {pipeline_mode = #tpu.pipeline_mode<synchronous>, transform_indices = @transform_4, window_bounds = array<i64: 1, 32>}, {pipeline_mode = #tpu.pipeline_mode<synchronous>, transform_indices = @transform_5, window_bounds = array<i64: 32, 32>}, {pipeline_mode = #tpu.pipeline_mode<synchronous>, transform_indices = @transform_6, window_bounds = array<i64: 32, 32>}, {pipeline_mode = #tpu.pipeline_mode<synchronous>, transform_indices = @transform_7, window_bounds = array<i64: 1, 32>}, {transform_indices = @transform_8, window_bounds = array<i64: 256, 32>}, {transform_indices = @transform_9, window_bounds = array<i64: 256, 32>}, {transform_indices = @transform_10, window_bounds = array<i64: 256, 32>}]} {
    %c0 = arith.constant 0 : index
    %c0_0 = arith.constant 0 : index
    %0 = vector.load %arg1[%c0, %c0_0] : memref<256x32xf32, #tpu.memory_space<vmem>>, vector<256x32xf32>
    %c0_1 = arith.constant 0 : index
    %c0_2 = arith.constant 0 : index
    %1 = vector.load %arg2[%c0_1, %c0_2] : memref<1x32xf32, #tpu.memory_space<vmem>>, vector<1x32xf32>
    %c0_3 = arith.constant 0 : index
    %c0_4 = arith.constant 0 : index
    %2 = vector.load %arg3[%c0_3, %c0_4] : memref<1x32xf32, #tpu.memory_space<vmem>>, vector<1x32xf32>
    %cst = arith.constant dense<0.000000e+00> : vector<256xf32>
    %3 = vector.multi_reduction <add>, %0, %cst [1] : vector<256x32xf32> to vector<256xf32>
    %4 = vector.shape_cast %3 : vector<256xf32> to vector<256x1xf32>
    %cst_5 = arith.constant 3.200000e+01 : f32
    %5 = vector.broadcast %cst_5 : f32 to vector<256x1xf32>
    %6 = arith.divf %4, %5 : vector<256x1xf32>
    %7 = vector.broadcast %6 : vector<256x1xf32> to vector<256x32xf32>
    %8 = arith.subf %0, %7 : vector<256x32xf32>
    %9 = arith.mulf %8, %8 : vector<256x32xf32>
    %cst_6 = arith.constant dense<0.000000e+00> : vector<256xf32>
    %10 = vector.multi_reduction <add>, %9, %cst_6 [1] : vector<256x32xf32> to vector<256xf32>
    %11 = vector.shape_cast %10 : vector<256xf32> to vector<256x1xf32>
    %cst_7 = arith.constant 3.200000e+01 : f32
    %12 = vector.broadcast %cst_7 : f32 to vector<256x1xf32>
    %13 = arith.divf %11, %12 : vector<256x1xf32>
    %cst_8 = arith.constant 9.99999974E-6 : f32
    %14 = vector.broadcast %cst_8 : f32 to vector<256x1xf32>
    %15 = arith.addf %13, %14 : vector<256x1xf32>
    %16 = math.rsqrt %15 : vector<256x1xf32>
    %17 = vector.broadcast %16 : vector<256x1xf32> to vector<256x32xf32>
    %18 = arith.mulf %8, %17 : vector<256x32xf32>
    %19 = vector.broadcast %1 : vector<1x32xf32> to vector<256x32xf32>
    %20 = arith.mulf %18, %19 : vector<256x32xf32>
    %21 = vector.broadcast %2 : vector<1x32xf32> to vector<256x32xf32>
    %22 = arith.addf %20, %21 : vector<256x32xf32>
    %c0_9 = arith.constant 0 : index
    %c0_10 = arith.constant 0 : index
    %23 = vector.load %arg4[%c0_9, %c0_10] : memref<32x32xf32, #tpu.memory_space<vmem>>, vector<32x32xf32>
    %cst_11 = arith.constant dense<0.000000e+00> : vector<256x32xf32>
    %24 = tpu.matmul %22, %23, %cst_11 {dimension_numbers = #tpu.dot_dimension_numbers<[1], [0], [0], [1], [0, 0, 1, 1], [], []>} : vector<256x32xf32>, vector<32x32xf32>, vector<256x32xf32> -> vector<256x32xf32>
    %c0_12 = arith.constant 0 : index
    %c0_13 = arith.constant 0 : index
    %25 = vector.load %arg5[%c0_12, %c0_13] : memref<1x32xf32, #tpu.memory_space<vmem>>, vector<1x32xf32>
    %26 = vector.broadcast %25 : vector<1x32xf32> to vector<256x32xf32>
    %27 = arith.addf %24, %26 : vector<256x32xf32>
    %c0_14 = arith.constant 0 : index
    %c0_15 = arith.constant 0 : index
    %28 = vector.load %arg9[%c0_14, %c0_15] : memref<256x32xf32, #tpu.memory_space<vmem>>, vector<256x32xf32>
    tpu.vector_store %arg9[%c0_14, %c0_15], %27 {strides = array<i32>} : memref<256x32xf32, #tpu.memory_space<vmem>>, vector<256x32xf32>,
    %c0_16 = arith.constant 0 : index
    %c0_17 = arith.constant 0 : index
    %29 = vector.load %arg6[%c0_16, %c0_17] : memref<32x32xf32, #tpu.memory_space<vmem>>, vector<32x32xf32>
    %cst_18 = arith.constant dense<0.000000e+00> : vector<256x32xf32>
    %30 = tpu.matmul %22, %29, %cst_18 {dimension_numbers = #tpu.dot_dimension_numbers<[1], [0], [0], [1], [0, 0, 1, 1], [], []>} : vector<256x32xf32>, vector<32x32xf32>, vector<256x32xf32> -> vector<256x32xf32>
    %c0_19 = arith.constant 0 : index
    %c0_20 = arith.constant 0 : index
    %31 = vector.load %arg10[%c0_19, %c0_20] : memref<256x32xf32, #tpu.memory_space<vmem>>, vector<256x32xf32>
    tpu.vector_store %arg10[%c0_19, %c0_20], %30 {strides = array<i32>} : memref<256x32xf32, #tpu.memory_space<vmem>>, vector<256x32xf32>,
    %c0_21 = arith.constant 0 : index
    %c0_22 = arith.constant 0 : index
    %32 = vector.load %arg7[%c0_21, %c0_22] : memref<32x32xf32, #tpu.memory_space<vmem>>, vector<32x32xf32>
    %cst_23 = arith.constant dense<0.000000e+00> : vector<256x32xf32>
    %33 = tpu.matmul %22, %32, %cst_23 {dimension_numbers = #tpu.dot_dimension_numbers<[1], [0], [0], [1], [0, 0, 1, 1], [], []>} : vector<256x32xf32>, vector<32x32xf32>, vector<256x32xf32> -> vector<256x32xf32>
    %c0_24 = arith.constant 0 : index
    %c0_25 = arith.constant 0 : index
    %34 = vector.load %arg8[%c0_24, %c0_25] : memref<1x32xf32, #tpu.memory_space<vmem>>, vector<1x32xf32>
    %35 = vector.broadcast %34 : vector<1x32xf32> to vector<256x32xf32>
    %36 = arith.addf %33, %35 : vector<256x32xf32>
    %c0_26 = arith.constant 0 : index
    %c0_27 = arith.constant 0 : index
    %37 = vector.load %arg11[%c0_26, %c0_27] : memref<256x32xf32, #tpu.memory_space<vmem>>, vector<256x32xf32>
    tpu.vector_store %arg11[%c0_26, %c0_27], %36 {strides = array<i32>} : memref<256x32xf32, #tpu.memory_space<vmem>>, vector<256x32xf32>,
    return
  }
  func.func @transform_0(%arg0: i32) -> (i32, i32) {
    %c0_i32 = arith.constant 0 : i32
    %c0_i32_0 = arith.constant 0 : i32
    return %arg0, %c0_i32 : i32, i32
  }
  func.func @transform_1(%arg0: i32) -> (i32, i32) {
    %c0_i32 = arith.constant 0 : i32
    %c0_i32_0 = arith.constant 0 : i32
    %c0_i32_1 = arith.constant 0 : i32
    return %c0_i32, %c0_i32_0 : i32, i32
  }
  func.func @transform_2(%arg0: i32) -> (i32, i32) {
    %c0_i32 = arith.constant 0 : i32
    %c0_i32_0 = arith.constant 0 : i32
    %c0_i32_1 = arith.constant 0 : i32
    return %c0_i32, %c0_i32_0 : i32, i32
  }
  func.func @transform_3(%arg0: i32) -> (i32, i32) {
    %c0_i32 = arith.constant 0 : i32
    %c0_i32_0 = arith.constant 0 : i32
    %c0_i32_1 = arith.constant 0 : i32
    return %c0_i32, %c0_i32_0 : i32, i32
  }
  func.func @transform_4(%arg0: i32) -> (i32, i32) {
    %c0_i32 = arith.constant 0 : i32
    %c0_i32_0 = arith.constant 0 : i32
    %c0_i32_1 = arith.constant 0 : i32
    return %c0_i32, %c0_i32_0 : i32, i32
  }
  func.func @transform_5(%arg0: i32) -> (i32, i32) {
    %c0_i32 = arith.constant 0 : i32
    %c0_i32_0 = arith.constant 0 : i32
    %c0_i32_1 = arith.constant 0 : i32
    return %c0_i32, %c0_i32_0 : i32, i32
  }
  func.func @transform_6(%arg0: i32) -> (i32, i32) {
    %c0_i32 = arith.constant 0 : i32
    %c0_i32_0 = arith.constant 0 : i32
    %c0_i32_1 = arith.constant 0 : i32
    return %c0_i32, %c0_i32_0 : i32, i32
  }
  func.func @transform_7(%arg0: i32) -> (i32, i32) {
    %c0_i32 = arith.constant 0 : i32
    %c0_i32_0 = arith.constant 0 : i32
    %c0_i32_1 = arith.constant 0 : i32
    return %c0_i32, %c0_i32_0 : i32, i32
  }
  func.func @transform_8(%arg0: i32) -> (i32, i32) {
    %c0_i32 = arith.constant 0 : i32
    %c0_i32_0 = arith.constant 0 : i32
    return %arg0, %c0_i32 : i32, i32
  }
  func.func @transform_9(%arg0: i32) -> (i32, i32) {
    %c0_i32 = arith.constant 0 : i32
    %c0_i32_0 = arith.constant 0 : i32
    return %arg0, %c0_i32 : i32, i32
  }
  func.func @transform_10(%arg0: i32) -> (i32, i32) {
    %c0_i32 = arith.constant 0 : i32
    %c0_i32_0 = arith.constant 0 : i32
    return %arg0, %c0_i32 : i32, i32
  }
}

</mosaic_0001>

<bundles_post_ra>
// kernel: tpu_custom_call.1
= control target key start
LH: loop header
LB: loop body
LE: loop exit
PB: predicated region body
PF: predicated region fallthrough
CT: control target
= control target key end

     0   :  { %vm66_vm0 = vcmask 261120   ;;  %v1594_v28 = vmov 32.0   ;;  %s3260_s0 = inlined_call_operand.vmem [shape: f32[256,32], index: 0, kind: input, shape index: {}]   ;;  %s3261_s1 = inlined_call_operand.vmem [shape: f32[1,32], index: 1, kind: input, shape index: {}]   ;;  %s3262_s2 = inlined_call_operand.vmem [shape: f32[1,32], index: 2, kind: input, shape index: {}]   ;;  %s3263_s3 = inlined_call_operand.vmem [shape: f32[32,32], index: 3, kind: input, shape index: {}]   ;;  %s3264_s5 = inlined_call_operand.vmem [shape: f32[32,32], index: 5, kind: input, shape index: {}]   ;;  %s3265_s6 = inlined_call_operand.vmem [shape: f32[32,32], index: 6, kind: input, shape index: {}]   ;;  %s3266_s4 = inlined_call_operand.vmem [shape: f32[1,32], index: 4, kind: input, shape index: {}]   ;;  %s3267_s7 = inlined_call_operand.vmem [shape: f32[1,32], index: 7, kind: input, shape index: {}]   ;;  %s3268_s9 = inlined_call_operand.vmem [shape: f32[256,32], index: 9, kind: output, shape index: {1}]   ;;  %s3269_s8 = inlined_call_operand.vmem [shape: f32[256,32], index: 8, kind: output, shape index: {0}]   ;;  %s3270_s10 = inlined_call_operand.vmem [shape: f32[256,32], index: 10, kind: output, shape index: {2}]  }
   0x1   :  { %v1653_v0 = vld [vmem:[%s3260_s0 + $0x8] sm:$0xff]  ;;  %v32_v1 = vld [vmem:[%s3260_s0] sm:$0xff]  ;;  %v1661_v2 = vld [vmem:[%s3260_s0 + $0x10] sm:$0xff]  ;;  %1524 = vrcp.f32 %v1594_v28 }
   0x2   :  { %v70_v3 = vsel %vm66_vm0, %v1653_v0, 0.0  ;;  %v67_v4 = vsel %vm66_vm0, %v32_v1, 0.0  ;;  %v73_v5 = vsel %vm66_vm0, %v1661_v2, 0.0  ;;  %v57_v6 = vld [vmem:[%s3260_s0 + $0xc8] sm:$0xff]  ;;  %v56_v7 = vld [vmem:[%s3260_s0 + $0xc0] sm:$0xff]  ;;  %v58_v8 = vld [vmem:[%s3260_s0 + $0xd0] sm:$0xff] }
   0x3   :  { %71 = vadd.xlane.f32.xlu1 %v70_v3  ;;  %68 = vadd.xlane.f32.xlu0 %v67_v4  ;;  %v142_v9 = vsel %vm66_vm0, %v57_v6, 0.0  ;;  %v139_v10 = vsel %vm66_vm0, %v56_v7, 0.0  ;;  %v145_v11 = vsel %vm66_vm0, %v58_v8, 0.0  ;;  %v1683_v12 = vld [vmem:[%s3260_s0 + $0xd8] sm:$0xff]  ;;  %v1693_v14 = vld [vmem:[%s3260_s0 + $0x20] sm:$0xff]  ;;  %v1709_v19 = vld [vmem:[%s3260_s0 + $0x28] sm:$0xff] }
   0x4   :  { %74 = vadd.xlane.f32.xlu2 %v73_v5  ;;  %v1688_v13 = vld [vmem:[%s3260_s0 + $0x18] sm:$0xff]  ;;  %v148_v15 = vsel %vm66_vm0, %v1683_v12, 0.0  ;;  %v79_v17 = vsel %vm66_vm0, %v1693_v14, 0.0  ;;  %v1704_v18 = vld [vmem:[%s3260_s0 + $0xe0] sm:$0xff]  ;;  %v1714_v20 = vld [vmem:[%s3260_s0 + $0xe8] sm:$0xff]  ;;  %v82_v22 = vsel %vm66_vm0, %v1709_v19, 0.0 }
   0x5   :  { %v76_v16 = vsel %vm66_vm0, %v1688_v13, 0.0  ;;  %v151_v21 = vsel %vm66_vm0, %v1704_v18, 0.0  ;;  %v154_v23 = vsel %vm66_vm0, %v1714_v20, 0.0  ;;  %v1725_v24 = vld [vmem:[%s3260_s0 + $0xf0] sm:$0xff]  ;;  %v1750_v48 = vld [vmem:[%s3260_s0 + $0x38] sm:$0xff] }
   0x6   :  { %v1730_v25 = vld [vmem:[%s3260_s0 + $0x30] sm:$0xff]  ;;  %v157_v26 = vsel %vm66_vm0, %v1725_v24, 0.0  ;;  %v88_v53 = vsel %vm66_vm0, %v1750_v48, 0.0 }
   0x7   :  { %v85_v27 = vsel %vm66_vm0, %v1730_v25, 0.0  ;;  %v1525_v29 = vpop.eup %1524 }
   0x8   :  { %v164_v30 = vmul.f32 32.0, %v1525_v29  ;;  %vm168_vm1 = vweird.f32 %v1525_v29 }
   0xa   :  { %v165_v31 = vsub.f32 1.0, %v164_v30 }
   0xb   :  { %143 = vadd.xlane.f32.xlu1 %v142_v9  ;;  %140 = vadd.xlane.f32.xlu0 %v139_v10 }
   0xc   :  { %146 = vadd.xlane.f32.xlu2 %v145_v11  ;;  %v166_v32 = vmul.f32 %v1525_v29, %v165_v31 }
   0xe   :  { %v167_v33 = vadd.f32 %v1525_v29, %v166_v32 }
  0x10   :  { %v1736_v34 = vsel %vm168_vm1, %v1525_v29, %v167_v33 }
  0x13   :  { %149 = vadd.xlane.f32.xlu1 %v148_v15  ;;  %77 = vadd.xlane.f32.xlu0 %v76_v16 }
  0x14   :  { %80 = vadd.xlane.f32.xlu2 %v79_v17 }
  0x1b   :  { %152 = vadd.xlane.f32.xlu0 %v151_v21  ;;  %83 = vadd.xlane.f32.xlu1 %v82_v22 }
  0x1c   :  { %155 = vadd.xlane.f32.xlu2 %v154_v23 }
  0x23   :  { %158 = vadd.xlane.f32.xlu0 %v157_v26 }
  0x24   :  { %86 = vadd.xlane.f32.xlu2 %v85_v27 }
  0x76   :  { %v72_v35 = vpop.xlane.xlu1 %71  ;;  %v69_v36 = vpop.xlane.xlu0 %68 }
  0x77   :  { %v170_v37 = vmul.f32 %v1736_v34, %v69_v36  ;;  %v75_v38 = vpop.xlane.xlu2 %74  ;;  %v171_v49 = vmul.f32 %v1736_v34, %v72_v35 }
  0x78   :  { %v172_v44 = vmul.f32 %v1736_v34, %v75_v38 }
  0x79   :  { %v1739_v39 = vsub.f32 %v32_v1, %v170_v37  ;;  %v1770_v58 = vsub.f32 %v1653_v0, %v171_v49 }
  0x7a   :  { %v1761_v54 = vsub.f32 %v1661_v2, %v172_v44 }
  0x7b   :  { %v234_v40 = vmul.f32 %v1739_v39, %v1739_v39  ;;  %v235_v3 = vmul.f32 %v1770_v58, %v1770_v58 }
  0x7c   :  { %v236_v63 = vmul.f32 %v1761_v54, %v1761_v54 }
  0x7d   :  { %v266_v41 = vsel %vm66_vm0, %v234_v40, 0.0  ;;  %v269_v9 = vsel %vm66_vm0, %v235_v3, 0.0  ;;  %v1897_v3 = vld [vmem:[%s3265_s6 + $0x18] sm:$0xff] }
  0x7e   :  { %v144_v42 = vpop.xlane.xlu1 %143  ;;  %267 = vadd.xlane.f32.xlu0 %v266_v41  ;;  %v141_v43 = vpop.xlane.xlu0 %140  ;;  %v272_v5 = vsel %vm66_vm0, %v236_v63, 0.0  ;;  %v1884_v63 = vld [vmem:[%s3260_s0 + $0x68] sm:$0xff]  ;;  %1266 = vmatpush.msra.mxu2 %v1897_v3 }
  0x7f   :  { %v195_v45 = vmul.f32 %v1736_v34, %v144_v42  ;;  %v194_v46 = vmul.f32 %v1736_v34, %v141_v43  ;;  %v147_v47 = vpop.xlane.xlu2 %146  ;;  %v1842_v43 = vld [vmem:[%s3260_s0 + $0x48] sm:$0xff] }
  0x80   :  { %v196_v50 = vmul.f32 %v1736_v34, %v147_v47  ;;  %v94_v49 = vsel %vm66_vm0, %v1842_v43, 0.0 }
  0x81   :  { %v1754_v51 = vsub.f32 %v57_v6, %v195_v45  ;;  %v1756_v52 = vsub.f32 %v56_v7, %v194_v46 }
  0x82   :  { %v1763_v55 = vsub.f32 %v58_v8, %v196_v50 }
  0x83   :  { %v259_v56 = vmul.f32 %v1754_v51, %v1754_v51  ;;  %v258_v57 = vmul.f32 %v1756_v52, %v1756_v52 }
  0x84   :  { %v260_v2 = vmul.f32 %v1763_v55, %v1763_v55 }
  0x85   :  { %v341_v59 = vsel %vm66_vm0, %v259_v56, 0.0  ;;  %v338_v60 = vsel %vm66_vm0, %v258_v57, 0.0 }
  0x86   :  { %342 = vadd.xlane.f32.xlu2 %v341_v59  ;;  %89 = vadd.xlane.f32.xlu0 %v88_v53  ;;  %v150_v61 = vpop.xlane.xlu1 %149  ;;  %v78_v62 = vpop.xlane.xlu0 %77  ;;  %v344_v7 = vsel %vm66_vm0, %v260_v2, 0.0  ;;  %v1861_v53 = vld [vmem:[%s3260_s0 + $0x50] sm:$0xff]  ;;  %v1870_v59 = vld [vmem:[%s3260_s0 + $0x58] sm:$0xff] }
  0x87   :  { %339 = vadd.xlane.f32.xlu1 %v338_v60  ;;  %v197_v1 = vmul.f32 %v1736_v34, %v150_v61  ;;  %v173_v0 = vmul.f32 %v1736_v34, %v78_v62  ;;  %v81_v4 = vpop.xlane.xlu2 %80  ;;  %v97_v57 = vsel %vm66_vm0, %v1861_v53, 0.0  ;;  %v100_v60 = vsel %vm66_vm0, %v1870_v59, 0.0  ;;  %v1877_v61 = vld [vmem:[%s3260_s0 + $0x60] sm:$0xff]  ;;  %v851_v2 = vld [vmem:[%s3263_s3 + $0x18] sm:$0xff] }
  0x88   :  { %v174_v11 = vmul.f32 %v1736_v34, %v81_v4  ;;  %v103_v62 = vsel %vm66_vm0, %v1877_v61, 0.0  ;;  %964 = vmatpush.msra.mxu0 %v851_v2  ;;  %v850_v4 = vld [vmem:[%s3263_s3 + $0x10] sm:$0xff]  ;;  %1507 = vmatpush.msra.mxu3 %v851_v2 }
  0x89   :  { %v1784_v6 = vsub.f32 %v1683_v12, %v197_v1  ;;  %v1788_v8 = vsub.f32 %v1688_v13, %v173_v0  ;;  %v1800_v13 = vld [vmem:[%s3260_s0 + $0xf8] sm:$0xff]  ;;  %v106_v1 = vsel %vm66_vm0, %v1884_v63, 0.0 }
  0x8a   :  { %v1803_v21 = vsub.f32 %v1693_v14, %v174_v11  ;;  %v160_v27 = vsel %vm66_vm0, %v1800_v13, 0.0  ;;  %v1100_v0 = vld [vmem:[%s3264_s5 + $0x18] sm:$0xff]  ;;  %965 = vmatpush.msra.mxu0 %v850_v4  ;;  %v1921_v11 = vld [vmem:[%s3265_s6 + $0x8] sm:$0xff]  ;;  %1508 = vmatpush.msra.mxu3 %v850_v4 }
  0x8b   :  { %v261_v15 = vmul.f32 %v1784_v6, %v1784_v6  ;;  %v237_v12 = vmul.f32 %v1788_v8, %v1788_v8  ;;  %1113 = vmatpush.msra.mxu1 %v1100_v0 }
  0x8c   :  { %v238_v14 = vmul.f32 %v1803_v21, %v1803_v21 }
  0x8d   :  { %v347_v22 = vsel %vm66_vm0, %v261_v15, 0.0  ;;  %v275_v23 = vsel %vm66_vm0, %v237_v12, 0.0  ;;  %v848_v15 = vld [vmem:[%s3263_s3] sm:$0xff] }
  0x8e   :  { %273 = vadd.xlane.f32.xlu2 %v272_v5  ;;  %345 = vadd.xlane.f32.xlu0 %v344_v7  ;;  %v153_v10 = vpop.xlane.xlu0 %152  ;;  %v84_v28 = vpop.xlane.xlu1 %83  ;;  %v278_v35 = vsel %vm66_vm0, %v238_v14, 0.0  ;;  %v1099_v5 = vld [vmem:[%s3264_s5 + $0x10] sm:$0xff]  ;;  %v1097_v12 = vld [vmem:[%s3264_s5] sm:$0xff] }
  0x8f   :  { %270 = vadd.xlane.f32.xlu1 %v269_v9  ;;  %v198_v16 = vmul.f32 %v1736_v34, %v153_v10  ;;  %v156_v17 = vpop.xlane.xlu2 %155  ;;  %v175_v30 = vmul.f32 %v1736_v34, %v84_v28  ;;  %v1909_v7 = vld [vmem:[%s3265_s6 + $0x10] sm:$0xff]  ;;  %1114 = vmatpush.msra.mxu1 %v1099_v5  ;;  %v849_v9 = vld [vmem:[%s3263_s3 + $0x8] sm:$0xff] }
  0x90   :  { %v199_v29 = vmul.f32 %v1736_v34, %v156_v17  ;;  %1267 = vmatpush.msra.mxu2 %v1909_v7  ;;  %v1098_v10 = vld [vmem:[%s3264_s5 + $0x8] sm:$0xff]  ;;  %966 = vmatpush.msra.mxu0 %v849_v9 }
  0x91   :  { %v1808_v26 = vsub.f32 %v1704_v18, %v198_v16  ;;  %v1821_v18 = vld [vmem:[%s3260_s0 + $0x40] sm:$0xff]  ;;  %v1827_v33 = vsub.f32 %v1709_v19, %v175_v30  ;;  %1115 = vmatpush.msra.mxu1 %v1098_v10  ;;  %1509 = vmatpush.msra.mxu3 %v849_v9 }
  0x92   :  { %v1824_v32 = vsub.f32 %v1714_v20, %v199_v29  ;;  %v91_v37 = vsel %vm66_vm0, %v1821_v18, 0.0  ;;  %1268 = vmatpush.msra.mxu2 %v1921_v11  ;;  %v1933_v16 = vld [vmem:[%s3265_s6] sm:$0xff]  ;;  %967 = vmatpush.msra.mxu0 %v848_v15 }
  0x93   :  { %v262_v31 = vmul.f32 %v1808_v26, %v1808_v26  ;;  %v239_v20 = vmul.f32 %v1827_v33, %v1827_v33  ;;  %1116 = vmatpush.msra.mxu1 %v1097_v12  ;;  %1510 = vmatpush.msra.mxu3 %v848_v15 }
  0x94   :  { %v263_v19 = vmul.f32 %v1824_v32, %v1824_v32  ;;  %1269 = vmatpush.msra.mxu2 %v1933_v16 }
  0x95   :  { %v350_v36 = vsel %vm66_vm0, %v262_v31, 0.0  ;;  %v281_v45 = vsel %vm66_vm0, %v239_v20, 0.0  ;;  %1511 = vmatpush.msrb.mxu3 %v1100_v0 }
  0x96   :  { %348 = vadd.xlane.f32.xlu0 %v347_v22  ;;  %276 = vadd.xlane.f32.xlu2 %v275_v23  ;;  %v159_v40 = vpop.xlane.xlu0 %158  ;;  %v353_v46 = vsel %vm66_vm0, %v263_v19, 0.0 }
  0x97   :  { %161 = vadd.xlane.f32.xlu1 %v160_v27  ;;  %v87_v38 = vpop.xlane.xlu2 %86  ;;  %v200_v42 = vmul.f32 %v1736_v34, %v159_v40  ;;  %1512 = vmatpush.msrb.mxu3 %v1099_v5  ;;  %v1973_v5 = vld [vmem:[%s3261_s1] ss:$0 sm:$0xff] }
  0x98   :  { %v176_v41 = vmul.f32 %v1736_v34, %v87_v38 }
  0x99   :  { %v1850_v47 = vsub.f32 %v1725_v24, %v200_v42  ;;  %1513 = vmatpush.msrb.mxu3 %v1098_v10 }
  0x9a   :  { %v1845_v44 = vsub.f32 %v1730_v25, %v176_v41 }
  0x9b   :  { %v264_v25 = vmul.f32 %v1850_v47, %v1850_v47  ;;  %1514 = vmatpush.msrb.mxu3 %v1097_v12 }
  0x9c   :  { %v240_v50 = vmul.f32 %v1845_v44, %v1845_v44 }
  0x9d   :  { %v356_v56 = vsel %vm66_vm0, %v264_v25, 0.0 }
  0x9e   :  { %279 = vadd.xlane.f32.xlu2 %v278_v35  ;;  %351 = vadd.xlane.f32.xlu0 %v350_v36  ;;  %v284_v24 = vsel %vm66_vm0, %v240_v50, 0.0 }
  0x9f   :  { %92 = vadd.xlane.f32.xlu1 %v91_v37 }
  0xa6   :  { %282 = vadd.xlane.f32.xlu2 %v281_v45  ;;  %354 = vadd.xlane.f32.xlu0 %v353_v46 }
  0xa7   :  { %95 = vadd.xlane.f32.xlu1 %v94_v49 }
  0xae   :  { %285 = vadd.xlane.f32.xlu2 %v284_v24  ;;  %357 = vadd.xlane.f32.xlu0 %v356_v56 }
  0xaf   :  { %98 = vadd.xlane.f32.xlu1 %v97_v57 }
  0xb7   :  { %101 = vadd.xlane.f32.xlu1 %v100_v60 }
  0xbf   :  { %104 = vadd.xlane.f32.xlu1 %v103_v62 }
  0xc7   :  { %107 = vadd.xlane.f32.xlu1 %v106_v1 }
  0xf1   :  { %v268_v17 = vpop.xlane.xlu0 %267 }
  0xf2   :  { %v362_v22 = vmul.f32 %v268_v17, %v1736_v34  ;;  %v1983_v17 = vld [vmem:[%s3262_s2] ss:$0 sm:$0xff] }
  0xf4   :  { %v394_v23 = vadd.f32 1e-05, %v362_v22 }
  0xf6   :  { %1526 = vrsqrt.f32 %v394_v23  ;;  %vm432_vm3 = vweird.f32 %v394_v23 }
  0xf9   :  { %v343_v27 = vpop.xlane.xlu2 %342  ;;  %v90_v28 = vpop.xlane.xlu0 %89 }
  0xfa   :  { %v387_v29 = vmul.f32 %v343_v27, %v1736_v34  ;;  %v340_v30 = vpop.xlane.xlu1 %339  ;;  %v177_v14 = vmul.f32 %v1736_v34, %v90_v28 }
  0xfb   :  { %v386_v31 = vmul.f32 %v340_v30, %v1736_v34 }
  0xfc   :  { %v1527_v35 = vpop.eup %1526  ;;  %v1940_v36 = vadd.f32 1e-05, %v387_v29  ;;  %v1943_v37 = vsub.f32 %v1750_v48, %v177_v14 }
  0xfd   :  { %v427_v38 = vmul.f32 %v1527_v35, %v394_v23  ;;  %v1945_v40 = vadd.f32 1e-05, %v386_v31  ;;  %vm433_vm2 = vweird.f32 %v1527_v35  ;;  %v1991_v31 = vld [vmem:[%s3260_s0 + $0x70] sm:$0xff] }
  0xfe   :  { %1528 = vrsqrt.f32 %v1940_v36  ;;  %v241_v41 = vmul.f32 %v1943_v37, %v1943_v37  ;;  %vm434_vm4 = vmor %vm432_vm3, %vm433_vm2  ;;  %vm682_vm7 = vweird.f32 %v1940_v36 }
  0xff   :  { %v428_v20 = vmul.f32 %v1527_v35, %v427_v38  ;;  %1530 = vrsqrt.f32 %v1945_v40  ;;  %vm672_vm6 = vweird.f32 %v1945_v40 }
 0x100   :  { %v287_v19 = vsel %vm66_vm0, %v241_v41, 0.0 }
 0x101   :  { %v429_v42 = vmul.f32 0.5, %v428_v20  ;;  %v274_v45 = vpop.xlane.xlu2 %273  ;;  %288 = vadd.xlane.f32.xlu2 %v287_v19  ;;  %v346_v46 = vpop.xlane.xlu0 %345 }
 0x102   :  { %v364_v48 = vmul.f32 %v274_v45, %v1736_v34  ;;  %v271_v49 = vpop.xlane.xlu1 %270  ;;  %v388_v50 = vmul.f32 %v346_v46, %v1736_v34 }
 0x103   :  { %v430_v25 = vsub.f32 1.5, %v429_v42  ;;  %v363_v24 = vmul.f32 %v271_v49, %v1736_v34  ;;  %v2011_v49 = vsel %vm66_vm0, %v1991_v31, 0.0 }
 0x104   :  { %v1955_v56 = vpop.eup %1528  ;;  %v1957_v57 = vadd.f32 1e-05, %v364_v48  ;;  %v1959_v60 = vadd.f32 1e-05, %v388_v50 }
 0x105   :  { %v1961_v62 = vpop.eup %1530  ;;  %v431_v1 = vmul.f32 %v1527_v35, %v430_v25  ;;  %v677_v2 = vmul.f32 %v1955_v56, %v1940_v36  ;;  %v1965_v0 = vadd.f32 1e-05, %v363_v24  ;;  %vm683_vm9 = vweird.f32 %v1955_v56 }
 0x106   :  { %v667_v4 = vmul.f32 %v1961_v62, %v1945_v40  ;;  %1532 = vrsqrt.f32 %v1957_v57  ;;  %vm673_vm5 = vweird.f32 %v1961_v62  ;;  %vm452_vm10 = vweird.f32 %v1957_v57  ;;  %vm2060_vm12 = vmor %vm682_vm7, %vm683_vm9 }
 0x107   :  { %v435_v9 = vsel %vm434_vm4, %v1527_v35, %v431_v1  ;;  %v678_v10 = vmul.f32 %v1955_v56, %v677_v2  ;;  %1534 = vrsqrt.f32 %v1965_v0  ;;  %vm2025_vm8 = vmor %vm672_vm6, %vm673_vm5  ;;  %vm442_vm13 = vweird.f32 %v1965_v0 }
 0x108   :  { %v668_v15 = vmul.f32 %v1961_v62, %v667_v4  ;;  %1536 = vrsqrt.f32 %v1959_v60  ;;  %v746_v12 = vmul.f32 %v435_v9, %v1739_v39  ;;  %vm692_vm14 = vweird.f32 %v1959_v60 }
 0x109   :  { %v277_v22 = vpop.xlane.xlu2 %276  ;;  %v349_v23 = vpop.xlane.xlu0 %348  ;;  %v679_v39 = vmul.f32 0.5, %v678_v10 }
 0x10a   :  { %v669_v27 = vmul.f32 0.5, %v668_v15  ;;  %v162_v28 = vpop.xlane.xlu1 %161  ;;  %v365_v29 = vmul.f32 %v277_v22, %v1736_v34  ;;  %v389_v30 = vmul.f32 %v349_v23, %v1736_v34  ;;  %v781_v14 = vmul.f32 %v1973_v5, %v746_v12 }
 0x10b   :  { %v201_v35 = vmul.f32 %v1736_v34, %v162_v28 }
 0x10c   :  { %v1995_v38 = vpop.eup %1532  ;;  %v670_v41 = vsub.f32 1.5, %v669_v27  ;;  %v1997_v20 = vadd.f32 1e-05, %v365_v29  ;;  %v1999_v19 = vadd.f32 1e-05, %v389_v30  ;;  %v816_v42 = vadd.f32 %v1983_v17, %v781_v14 }
 0x10d   :  { %v2002_v45 = vpop.eup %1534  ;;  %v447_v46 = vmul.f32 %v1995_v38, %v1957_v57  ;;  %v2007_v48 = vsub.f32 %v1800_v13, %v201_v35  ;;  %v680_v13 = vsub.f32 1.5, %v679_v39  ;;  %vm453_vm15 = vweird.f32 %v1995_v38 }
 0x10e   :  { %v2013_v50 = vpop.eup %1536  ;;  %v671_v25 = vmul.f32 %v1961_v62, %v670_v41  ;;  %v437_v24 = vmul.f32 %v2002_v45, %v1965_v0  ;;  %1538 = vrsqrt.f32 %v1997_v20  ;;  %1411 = vmatmul.msk.f32.vlgmr.msra.gmra.mxu0 %vm66_vm0, %v816_v42  ;;  %1443 = vmatmul.msk.f32.vlgmr.msra.gmra.mxu1 %vm66_vm0, %v816_v42  ;;  %vm443_vm11 = vweird.f32 %v2002_v45  ;;  %vm2110_vm3 = vmor %vm452_vm10, %vm453_vm15 }
 0x10f   :  { %v448_v40 = vmul.f32 %v1995_v38, %v447_v46  ;;  %v687_v2 = vmul.f32 %v2013_v50, %v1959_v60  ;;  %1475 = vmatmul.msk.f32.vlgmr.msra.gmra.mxu2 %vm66_vm0, %v816_v42  ;;  %1540 = vrsqrt.f32 %v1999_v19  ;;  %v265_v22 = vmul.f32 %v2007_v48, %v2007_v48  ;;  %vm2079_vm1 = vmor %vm442_vm13, %vm443_vm11 }
 0x110   :  { %v675_v4 = vsel %vm2025_vm8, %v1961_v62, %v671_v25  ;;  %v438_v9 = vmul.f32 %v2002_v45, %v437_v24  ;;  %v681_v14 = vmul.f32 %v1955_v56, %v680_v13  ;;  %vm693_vm2 = vweird.f32 %v2013_v50 }
 0x111   :  { %v449_v10 = vmul.f32 0.5, %v448_v40  ;;  %v688_v15 = vmul.f32 %v2013_v50, %v687_v2  ;;  %v280_v12 = vpop.xlane.xlu2 %279  ;;  %v352_v23 = vpop.xlane.xlu0 %351  ;;  %v770_v30 = vmul.f32 %v675_v4, %v1756_v52  ;;  %v359_v41 = vsel %vm66_vm0, %v265_v22, 0.0  ;;  %vm2133_vm4 = vmor %vm692_vm14, %vm693_vm2 }
 0x112   :  { %v439_v27 = vmul.f32 0.5, %v438_v9  ;;  %v93_v28 = vpop.xlane.xlu1 %92  ;;  %v366_v29 = vmul.f32 %v280_v12, %v1736_v34  ;;  %v390_v62 = vmul.f32 %v352_v23, %v1736_v34  ;;  %360 = vadd.xlane.f32.xlu0 %v359_v41  ;;  %vm462_vm5 = vweird.f32 %v1997_v20 }
 0x113   :  { %v689_v39 = vmul.f32 0.5, %v688_v15  ;;  %v178_v35 = vmul.f32 %v1736_v34, %v93_v28  ;;  %v450_v13 = vsub.f32 1.5, %v449_v10  ;;  %v805_v40 = vmul.f32 %v1973_v5, %v770_v30 }
 0x114   :  { %v2049_v42 = vpop.eup %1538  ;;  %v440_v46 = vsub.f32 1.5, %v439_v27  ;;  %v2052_v25 = vadd.f32 1e-05, %v366_v29  ;;  %v2054_v24 = vadd.f32 1e-05, %v390_v62  ;;  %vm702_vm6 = vweird.f32 %v1999_v19 }
 0x115   :  { %v457_v1 = vmul.f32 %v2049_v42, %v1997_v20  ;;  %v2068_v2 = vpop.eup %1540  ;;  %v2073_v36 = vsub.f32 %v1821_v18, %v178_v35  ;;  %v690_v9 = vsub.f32 1.5, %v689_v39  ;;  %v685_v18 = vsel %vm2060_vm12, %v1955_v56, %v681_v14 }
 0x116   :  { %v441_v4 = vmul.f32 %v2002_v45, %v440_v46  ;;  %1542 = vrsqrt.f32 %v2052_v25  ;;  %v697_v15 = vmul.f32 %v2068_v2, %v1999_v19  ;;  %v2095_v22 = vmul.f32 %v1995_v38, %v450_v13 }
 0x117   :  { %v458_v10 = vmul.f32 %v2049_v42, %v457_v1  ;;  %1544 = vrsqrt.f32 %v2054_v24  ;;  %v2099_v28 = vadd.f32 %v1983_v17, %v805_v40  ;;  %v691_v41 = vmul.f32 %v2013_v50, %v690_v9 }
 0x118   :  { %v445_v12 = vsel %vm2079_vm1, %v2002_v45, %v441_v4  ;;  %v698_v27 = vmul.f32 %v2068_v2, %v697_v15  ;;  %v242_v45 = vmul.f32 %v2073_v36, %v2073_v36  ;;  %v771_v13 = vmul.f32 %v685_v18, %v1754_v51 }
 0x119   :  { %v459_v23 = vmul.f32 0.5, %v458_v10  ;;  %v283_v29 = vpop.xlane.xlu2 %282  ;;  %v355_v62 = vpop.xlane.xlu0 %354  ;;  %v747_v39 = vmul.f32 %v445_v12, %v1770_v58  ;;  %1435 = vmatmul.msk.f32.vlgmr.msra.gmra.mxu3 %vm66_vm0, %v2099_v28  ;;  %vm463_vm7 = vweird.f32 %v2049_v42  ;;  %vm703_vm8 = vweird.f32 %v2068_v2 }
 0x11a   :  { %v96_v56 = vpop.xlane.xlu1 %95  ;;  %v367_v30 = vmul.f32 %v283_v29, %v1736_v34  ;;  %v391_v14 = vmul.f32 %v355_v62, %v1736_v34  ;;  %v699_v46 = vmul.f32 0.5, %v698_v27  ;;  %110 = vadd.xlane.f32.xlu0 %v2011_v49  ;;  %v290_v57 = vsel %vm66_vm0, %v242_v45, 0.0  ;;  %1515 = vmatpush.msra.mxu3 %v1897_v3  ;;  %vm2193_vm9 = vmor %vm462_vm5, %vm463_vm7 }
 0x11b   :  { %v179_v52 = vmul.f32 %v1736_v34, %v96_v56  ;;  %v782_v4 = vmul.f32 %v1973_v5, %v747_v39  ;;  %v460_v0 = vsub.f32 1.5, %v459_v23  ;;  %291 = vadd.xlane.f32.xlu2 %v290_v57  ;;  %v455_v3 = vsel %vm2110_vm3, %v1995_v38, %v2095_v22  ;;  %v2160_v38 = vld [vmem:[%s3260_s0 + $0x78] sm:$0xff]  ;;  %vm2209_vm10 = vmor %vm702_vm6, %vm703_vm8 }
 0x11c   :  { %v2119_v1 = vpop.eup %1542  ;;  %v2121_v58 = vadd.f32 1e-05, %v367_v30  ;;  %v2125_v40 = vadd.f32 1e-05, %v391_v14  ;;  %1516 = vmatpush.msra.mxu3 %v1909_v7  ;;  %v700_v10 = vsub.f32 1.5, %v699_v46  ;;  %v806_v12 = vmul.f32 %v1973_v5, %v771_v13 }
 0x11d   :  { %v467_v49 = vmul.f32 %v2119_v1, %v2052_v25  ;;  %v2141_v9 = vpop.eup %1544  ;;  %v2149_v60 = vsub.f32 %v1842_v43, %v179_v52  ;;  %v695_v43 = vsel %vm2133_vm4, %v2013_v50, %v691_v41  ;;  %v817_v7 = vadd.f32 %v1983_v17, %v782_v4 }
 0x11e   :  { %1546 = vrsqrt.f32 %v2121_v58  ;;  %v707_v18 = vmul.f32 %v2141_v9, %v2054_v24  ;;  %1517 = vmatpush.msra.mxu3 %v1921_v11  ;;  %v461_v22 = vmul.f32 %v2049_v42, %v460_v0  ;;  %v2175_v50 = vadd.f32 %v1983_v17, %v806_v12 }
 0x11f   :  { %v468_v15 = vmul.f32 %v2119_v1, %v467_v49  ;;  %1548 = vrsqrt.f32 %v2125_v40  ;;  %v243_v29 = vmul.f32 %v2149_v60, %v2149_v60  ;;  %1412 = vmatmul.msk.f32.gmra.mxu0 %vm66_vm0, %v817_v7  ;;  %1444 = vmatmul.msk.f32.gmra.mxu1 %vm66_vm0, %v817_v7  ;;  %v112_v45 = vsel %vm66_vm0, %v2160_v38, 0.0 }
 0x120   :  { %v708_v27 = vmul.f32 %v2141_v9, %v707_v18  ;;  %v701_v39 = vmul.f32 %v2068_v2, %v700_v10  ;;  %1476 = vmatmul.msk.f32.gmra.mxu2 %vm66_vm0, %v817_v7  ;;  %1518 = vmatpush.msra.mxu3 %v1933_v16  ;;  %v748_v16 = vmul.f32 %v455_v3, %v1761_v54  ;;  %vm472_vm11 = vweird.f32 %v2052_v25 }
 0x121   :  { %v469_v23 = vmul.f32 0.5, %v468_v15  ;;  %v286_v62 = vpop.xlane.xlu2 %285  ;;  %v358_v56 = vpop.xlane.xlu0 %357  ;;  %v293_v41 = vsel %vm66_vm0, %v243_v29, 0.0  ;;  %1436 = vmatmul.msk.f32.gmra.mxu3 %vm66_vm0, %v2175_v50  ;;  %v772_v51 = vmul.f32 %v695_v43, %v1763_v55  ;;  %vm473_vm12 = vweird.f32 %v2119_v1 }
 0x122   :  { %v99_v30 = vpop.xlane.xlu1 %98  ;;  %v368_v11 = vmul.f32 %v286_v62, %v1736_v34  ;;  %v392_v14 = vmul.f32 %v358_v56, %v1736_v34  ;;  %v709_v35 = vmul.f32 0.5, %v708_v27  ;;  %294 = vadd.xlane.f32.xlu1 %v293_v41  ;;  %vm712_vm13 = vweird.f32 %v2054_v24  ;;  %vm2249_vm15 = vmor %vm472_vm11, %vm473_vm12 }
 0x123   :  { %v180_v46 = vmul.f32 %v1736_v34, %v99_v30  ;;  %v470_v0 = vsub.f32 1.5, %v469_v23  ;;  %113 = vadd.xlane.f32.xlu2 %v112_v45  ;;  %v465_v55 = vsel %vm2193_vm9, %v2049_v42, %v461_v22  ;;  %vm713_vm14 = vweird.f32 %v2141_v9  ;;  %v2240_v42 = vld [vmem:[%s3260_s0 + $0x80] sm:$0xff] }
 0x124   :  { %v2187_v52 = vpop.eup %1546  ;;  %v2199_v57 = vadd.f32 1e-05, %v368_v11  ;;  %v2201_v4 = vadd.f32 1e-05, %v392_v14  ;;  %v710_v49 = vsub.f32 1.5, %v709_v35  ;;  %v705_v18 = vsel %vm2209_vm10, %v2068_v2, %v701_v39  ;;  %vm2270_vm1 = vmor %vm712_vm13, %vm713_vm14 }
 0x125   :  { %v477_v10 = vmul.f32 %v2187_v52, %v2121_v58  ;;  %v2216_v15 = vpop.eup %1548  ;;  %v2221_v54 = vsub.f32 %v1861_v53, %v180_v46  ;;  %v783_v53 = vmul.f32 %v1973_v5, %v748_v16  ;;  %v807_v43 = vmul.f32 %v1973_v5, %v772_v51  ;;  %v2296_v51 = vld [vmem:[%s3260_s0 + $0x88] sm:$0xff] }
 0x126   :  { %1550 = vrsqrt.f32 %v2199_v57  ;;  %v717_v3 = vmul.f32 %v2216_v15, %v2125_v40  ;;  %v471_v7 = vmul.f32 %v2119_v1, %v470_v0  ;;  %v711_v12 = vmul.f32 %v2141_v9, %v710_v49 }
 0x127   :  { %v478_v19 = vmul.f32 %v2187_v52, %v477_v10  ;;  %1552 = vrsqrt.f32 %v2201_v4  ;;  %v818_v27 = vadd.f32 %v1983_v17, %v783_v53  ;;  %v2255_v29 = vadd.f32 %v1983_v17, %v807_v43 }
 0x128   :  { %v718_v23 = vmul.f32 %v2216_v15, %v717_v3  ;;  %v244_v56 = vmul.f32 %v2221_v54, %v2221_v54  ;;  %v749_v30 = vmul.f32 %v465_v55, %v1788_v8  ;;  %v115_v45 = vsel %vm66_vm0, %v2240_v42, 0.0 }
 0x129   :  { %v479_v22 = vmul.f32 0.5, %v478_v19  ;;  %v773_v14 = vmul.f32 %v705_v18, %v1784_v6  ;;  %1413 = vmatmul.msk.f32.gmra.mxu0 %vm66_vm0, %v818_v27  ;;  %1437 = vmatmul.msk.f32.gmra.mxu3 %vm66_vm0, %v2255_v29  ;;  %v475_v6 = vsel %vm2249_vm15, %v2119_v1, %v471_v7  ;;  %vm482_vm2 = vweird.f32 %v2121_v58  ;;  %v2347_v58 = vld [vmem:[%s3260_s0 + $0x90] sm:$0xff] }
 0x12a   :  { %v102_v62 = vpop.xlane.xlu1 %101  ;;  %v719_v11 = vmul.f32 0.5, %v718_v23  ;;  %v296_v8 = vsel %vm66_vm0, %v244_v56, 0.0  ;;  %1445 = vmatmul.msk.f32.gmra.mxu1 %vm66_vm0, %v818_v27  ;;  %1477 = vmatmul.msk.f32.gmra.mxu2 %vm66_vm0, %v818_v27  ;;  %v784_v16 = vmul.f32 %v1973_v5, %v749_v30  ;;  %v715_v20 = vsel %vm2270_vm1, %v2141_v9, %v711_v12 }
 0x12b   :  { %v181_v25 = vmul.f32 %v1736_v34, %v102_v62  ;;  %v480_v41 = vsub.f32 1.5, %v479_v22  ;;  %116 = vadd.xlane.f32.xlu1 %v115_v45  ;;  %297 = vadd.xlane.f32.xlu0 %v296_v8  ;;  %v808_v1 = vmul.f32 %v1973_v5, %v773_v14  ;;  %vm483_vm3 = vweird.f32 %v2187_v52 }
 0x12c   :  { %v2264_v39 = vpop.eup %1550  ;;  %v720_v0 = vsub.f32 1.5, %v719_v11  ;;  %vm722_vm4 = vweird.f32 %v2125_v40  ;;  %vm723_vm5 = vweird.f32 %v2216_v15  ;;  %v118_v9 = vsel %vm66_vm0, %v2296_v51, 0.0  ;;  %vm2322_vm6 = vmor %vm482_vm2, %vm483_vm3 }
 0x12d   :  { %v487_v46 = vmul.f32 %v2264_v39, %v2199_v57  ;;  %v2285_v24 = vpop.eup %1552  ;;  %v2289_v13 = vsub.f32 %v1870_v59, %v181_v25  ;;  %v481_v55 = vmul.f32 %v2187_v52, %v480_v41  ;;  %v750_v3 = vmul.f32 %v475_v6, %v1803_v21  ;;  %vm2332_vm7 = vmor %vm722_vm4, %vm723_vm5 }
 0x12e   :  { %v727_v59 = vmul.f32 %v2285_v24, %v2201_v4  ;;  %v819_v18 = vadd.f32 %v1983_v17, %v784_v16  ;;  %v2316_v53 = vadd.f32 %v1983_v17, %v808_v1  ;;  %v774_v12 = vmul.f32 %v715_v20, %v1808_v26 }
 0x12f   :  { %v488_v49 = vmul.f32 %v2264_v39, %v487_v46  ;;  %v245_v10 = vmul.f32 %v2289_v13, %v2289_v13  ;;  %v721_v23 = vmul.f32 %v2216_v15, %v720_v0  ;;  %v485_v40 = vsel %vm2322_vm6, %v2187_v52, %v481_v55 }
 0x130   :  { %v728_v19 = vmul.f32 %v2285_v24, %v727_v59  ;;  %v785_v56 = vmul.f32 %v1973_v5, %v750_v3  ;;  %v809_v30 = vmul.f32 %v1973_v5, %v774_v12  ;;  %vm492_vm8 = vweird.f32 %v2199_v57 }
 0x131   :  { %v299_v7 = vsel %vm66_vm0, %v245_v10, 0.0  ;;  %v489_v2 = vmul.f32 0.5, %v488_v49  ;;  %1414 = vmatmul.msk.f32.gmra.mxu0 %vm66_vm0, %v819_v18  ;;  %1438 = vmatmul.msk.f32.gmra.mxu3 %vm66_vm0, %v2316_v53  ;;  %v725_v11 = vsel %vm2332_vm7, %v2216_v15, %v721_v23  ;;  %vm493_vm9 = vweird.f32 %v2264_v39 }
 0x132   :  { %v105_v43 = vpop.xlane.xlu1 %104  ;;  %v729_v21 = vmul.f32 0.5, %v728_v19  ;;  %300 = vadd.xlane.f32.xlu2 %v299_v7  ;;  %1446 = vmatmul.msk.f32.gmra.mxu1 %vm66_vm0, %v819_v18  ;;  %v121_v52 = vsel %vm66_vm0, %v2347_v58, 0.0  ;;  %vm732_vm10 = vweird.f32 %v2201_v4  ;;  %vm733_vm11 = vweird.f32 %v2285_v24  ;;  %vm2373_vm12 = vmor %vm492_vm8, %vm493_vm9 }
 0x133   :  { %v182_v27 = vmul.f32 %v1736_v34, %v105_v43  ;;  %1478 = vmatmul.msk.f32.gmra.mxu2 %vm66_vm0, %v819_v18  ;;  %119 = vadd.xlane.f32.xlu0 %v118_v9  ;;  %v751_v15 = vmul.f32 %v485_v40, %v1827_v33  ;;  %v820_v35 = vadd.f32 %v1983_v17, %v785_v56  ;;  %vm2379_vm13 = vmor %vm732_vm10, %vm733_vm11 }
 0x134   :  { %v730_v45 = vsub.f32 1.5, %v729_v21  ;;  %v2369_v8 = vadd.f32 %v1983_v17, %v809_v30  ;;  %v775_v6 = vmul.f32 %v725_v11, %v1824_v32  ;;  %v2389_v32 = vld [vmem:[%s3260_s0 + $0x98] sm:$0xff] }
 0x135   :  { %v2342_v26 = vsub.f32 %v1877_v61, %v182_v27  ;;  %v490_v61 = vsub.f32 1.5, %v489_v2  ;;  %v786_v20 = vmul.f32 %v1973_v5, %v751_v15  ;;  %v124_v10 = vsel %vm66_vm0, %v2389_v32, 0.0 }
 0x136   :  { %v731_v4 = vmul.f32 %v2285_v24, %v730_v45  ;;  %v810_v0 = vmul.f32 %v1973_v5, %v775_v6 }
 0x137   :  { %v246_v25 = vmul.f32 %v2342_v26, %v2342_v26  ;;  %v491_v41 = vmul.f32 %v2264_v39, %v490_v61  ;;  %v2443_v61 = vld [vmem:[%s3266_s4] ss:$0 sm:$0xff] }
 0x138   :  { %v735_v59 = vsel %vm2379_vm13, %v2285_v24, %v731_v4  ;;  %v2411_v9 = vadd.f32 %v1983_v17, %v810_v0  ;;  %v2421_v24 = vld [vmem:[%s3260_s0 + $0xa0] sm:$0xff] }
 0x139   :  { %v302_v14 = vsel %vm66_vm0, %v246_v25, 0.0  ;;  %1415 = vmatmul.msk.f32.gmra.mxu0 %vm66_vm0, %v820_v35  ;;  %1439 = vmatmul.msk.f32.gmra.mxu3 %vm66_vm0, %v2369_v8  ;;  %v495_v49 = vsel %vm2373_vm12, %v2264_v39, %v491_v41  ;;  %v776_v3 = vmul.f32 %v735_v59, %v1850_v47  ;;  %v127_v47 = vsel %vm66_vm0, %v2421_v24, 0.0 }
 0x13a   :  { %303 = vadd.xlane.f32.xlu1 %v302_v14  ;;  %v108_v57 = vpop.xlane.xlu1 %107  ;;  %122 = vadd.xlane.f32.xlu2 %v121_v52  ;;  %v752_v39 = vmul.f32 %v495_v49, %v1845_v44 }
 0x13b   :  { %v183_v16 = vmul.f32 %v1736_v34, %v108_v57  ;;  %1447 = vmatmul.msk.f32.gmra.mxu1 %vm66_vm0, %v820_v35  ;;  %1479 = vmatmul.msk.f32.gmra.mxu2 %vm66_vm0, %v820_v35  ;;  %v811_v44 = vmul.f32 %v1973_v5, %v776_v3 }
 0x13c   :  { %v787_v18 = vmul.f32 %v1973_v5, %v752_v39 }
 0x13d   :  { %v2394_v1 = vsub.f32 %v1884_v63, %v183_v16  ;;  %v821_v63 = vadd.f32 %v1983_v17, %v786_v20  ;;  %v2431_v7 = vadd.f32 %v1983_v17, %v811_v44 }
 0x13e   :  { %v822_v43 = vadd.f32 %v1983_v17, %v787_v18 }
 0x13f   :  { %v247_v55 = vmul.f32 %v2394_v1, %v2394_v1 }
 0x141   :  { %v305_v19 = vsel %vm66_vm0, %v247_v55, 0.0  ;;  %1416 = vmatmul.msk.f32.gmra.mxu0 %vm66_vm0, %v821_v63  ;;  %1440 = vmatmul.msk.f32.gmra.mxu3 %vm66_vm0, %v2411_v9 }
 0x142   :  { %125 = vadd.xlane.f32.xlu1 %v124_v10  ;;  %306 = vadd.xlane.f32.xlu0 %v305_v19 }
 0x143   :  { %1448 = vmatmul.msk.f32.gmra.mxu1 %vm66_vm0, %v821_v63  ;;  %1480 = vmatmul.msk.f32.gmra.mxu2 %vm66_vm0, %v821_v63 }
 0x149   :  { %1417 = vmatmul.msk.f32.gmra.mxu0 %vm66_vm0, %v822_v43  ;;  %1441 = vmatmul.msk.f32.gmra.mxu3 %vm66_vm0, %v2431_v7 }
 0x14a   :  { %128 = vadd.xlane.f32.xlu0 %v127_v47 }
 0x14b   :  { %1449 = vmatmul.msk.f32.gmra.mxu1 %vm66_vm0, %v822_v43  ;;  %1481 = vmatmul.msk.f32.gmra.mxu2 %vm66_vm0, %v822_v43  ;;  %v2483_v43 = vld [vmem:[%s3260_s0 + $0xa8] sm:$0xff] }
 0x174   :  { %v289_v12 = vpop.xlane.xlu2 %288 }
 0x175   :  { %v369_v22 = vmul.f32 %v289_v12, %v1736_v34 }
 0x177   :  { %v401_v23 = vadd.f32 1e-05, %v369_v22 }
 0x179   :  { %1554 = vrsqrt.f32 %v401_v23  ;;  %vm502_vm14 = vweird.f32 %v401_v23 }
 0x17f   :  { %v1555_v2 = vpop.eup %1554 }
 0x180   :  { %v497_v21 = vmul.f32 %v1555_v2, %v401_v23  ;;  %vm503_vm15 = vweird.f32 %v1555_v2 }
 0x181   :  { %vm504_vm1 = vmor %vm502_vm14, %vm503_vm15 }
 0x182   :  { %v498_v27 = vmul.f32 %v1555_v2, %v497_v21 }
 0x184   :  { %v499_v62 = vmul.f32 0.5, %v498_v27  ;;  %v130_v27 = vsel %vm66_vm0, %v2483_v43, 0.0 }
 0x185   :  { %v361_v56 = vpop.xlane.xlu0 %360 }
 0x186   :  { %v500_v40 = vsub.f32 1.5, %v499_v62  ;;  %v393_v11 = vmul.f32 %v361_v56, %v1736_v34 }
 0x188   :  { %v501_v30 = vmul.f32 %v1555_v2, %v500_v40  ;;  %v425_v25 = vadd.f32 1e-05, %v393_v11 }
 0x18a   :  { %v505_v45 = vsel %vm504_vm1, %v1555_v2, %v501_v30  ;;  %1556 = vrsqrt.f32 %v425_v25  ;;  %vm742_vm3 = vweird.f32 %v425_v25 }
 0x18b   :  { %v969_v52 = vpop.f32.mrf.mxu0  ;;  %v1118_v14 = vpop.f32.mrf.mxu1  ;;  %v753_v15 = vmul.f32 %v505_v45, %v1943_v37  ;;  %v2460_v37 = vld [vmem:[%s3267_s7] ss:$0 sm:$0xff] }
 0x18c   :  { %v970_v35 = vadd.f32 %v2443_v61, %v969_v52  ;;  %1214 = vst.msk [vmem:[%s3268_s9] sm:$0xff] %vm66_vm0, %v1118_v14 }
 0x18d   :  { %v788_v57 = vmul.f32 %v1973_v5, %v753_v15  ;;  %v111_v6 = vpop.xlane.xlu0 %110 }
 0x18e   :  { %1065 = vst.msk [vmem:[%s3269_s8] sm:$0xff] %vm66_vm0, %v970_v35  ;;  %v292_v46 = vpop.xlane.xlu2 %291  ;;  %v184_v4 = vmul.f32 %v1736_v34, %v111_v6 }
 0x18f   :  { %v823_v41 = vadd.f32 %v1983_v17, %v788_v57  ;;  %v370_v16 = vmul.f32 %v292_v46, %v1736_v34 }
 0x190   :  { %v1557_v33 = vpop.eup %1556  ;;  %v2467_v20 = vsub.f32 %v1991_v31, %v184_v4 }
 0x191   :  { %1418 = vmatmul.msk.f32.gmra.mxu0 %vm66_vm0, %v823_v41  ;;  %1450 = vmatmul.msk.f32.gmra.mxu1 %vm66_vm0, %v823_v41  ;;  %v737_v49 = vmul.f32 %v1557_v33, %v425_v25  ;;  %v402_v59 = vadd.f32 1e-05, %v370_v16  ;;  %vm743_vm2 = vweird.f32 %v1557_v33 }
 0x192   :  { %v1271_v0 = vpop.f32.mrf.mxu2  ;;  %1482 = vmatmul.msk.f32.gmra.mxu2 %vm66_vm0, %v823_v41  ;;  %v248_v55 = vmul.f32 %v2467_v20, %v2467_v20  ;;  %vm744_vm4 = vmor %vm742_vm3, %vm743_vm2 }
 0x193   :  { %v1272_v10 = vadd.f32 %v2460_v37, %v1271_v0  ;;  %v738_v63 = vmul.f32 %v1557_v33, %v737_v49  ;;  %1558 = vrsqrt.f32 %v402_v59  ;;  %vm512_vm6 = vweird.f32 %v402_v59 }
 0x194   :  { %v308_v31 = vsel %vm66_vm0, %v248_v55, 0.0 }
 0x195   :  { %1367 = vst.msk [vmem:[%s3270_s10] sm:$0xff] %vm66_vm0, %v1272_v10  ;;  %v739_v19 = vmul.f32 0.5, %v738_v63  ;;  %v295_v39 = vpop.xlane.xlu1 %294  ;;  %309 = vadd.xlane.f32.xlu2 %v308_v31 }
 0x196   :  { %v371_v3 = vmul.f32 %v295_v39, %v1736_v34  ;;  %v114_v18 = vpop.xlane.xlu2 %113 }
 0x197   :  { %v740_v44 = vsub.f32 1.5, %v739_v19  ;;  %v185_v47 = vmul.f32 %v1736_v34, %v114_v18 }
 0x198   :  { %v2485_v12 = vadd.f32 1e-05, %v371_v3 }
 0x199   :  { %v1559_v22 = vpop.eup %1558  ;;  %v741_v23 = vmul.f32 %v1557_v33, %v740_v44  ;;  %v2488_v2 = vsub.f32 %v2160_v38, %v185_v47 }
 0x19a   :  { %v507_v21 = vmul.f32 %v1559_v22, %v402_v59  ;;  %1560 = vrsqrt.f32 %v2485_v12  ;;  %vm513_vm5 = vweird.f32 %v1559_v22  ;;  %vm522_vm9 = vweird.f32 %v2485_v12 }
 0x19b   :  { %v745_v62 = vsel %vm744_vm4, %v1557_v33, %v741_v23  ;;  %v249_v40 = vmul.f32 %v2488_v2, %v2488_v2  ;;  %v2522_v33 = vld [vmem:[%s3260_s0 + $0xb0] sm:$0xff]  ;;  %vm514_vm7 = vmor %vm512_vm6, %vm513_vm5 }
 0x19c   :  { %v508_v56 = vmul.f32 %v1559_v22, %v507_v21  ;;  %v1041_v30 = vpop.f32.mrf.mxu3  ;;  %v777_v11 = vmul.f32 %v745_v62, %v2007_v48  ;;  %v972_v25 = vpop.f32.mrf.mxu0  ;;  %v133_v31 = vsel %vm66_vm0, %v2522_v33, 0.0 }
 0x19d   :  { %v1042_v45 = vadd.f32 %v2443_v61, %v1041_v30  ;;  %v1121_v38 = vpop.f32.mrf.mxu1  ;;  %v311_v52 = vsel %vm66_vm0, %v249_v40, 0.0  ;;  %131 = vadd.xlane.f32.xlu2 %v130_v27  ;;  %v973_v15 = vadd.f32 %v2443_v61, %v972_v25 }
 0x19e   :  { %v509_v14 = vmul.f32 0.5, %v508_v56  ;;  %1215 = vst.msk [vmem:[%s3268_s9 + $0x8] sm:$0xff] %vm66_vm0, %v1121_v38  ;;  %312 = vadd.xlane.f32.xlu1 %v311_v52  ;;  %v812_v35 = vmul.f32 %v1973_v5, %v777_v11  ;;  %v117_v48 = vpop.xlane.xlu1 %116  ;;  %v298_v57 = vpop.xlane.xlu0 %297  ;;  %v2570_v52 = vld [vmem:[%s3260_s0 + $0xb8] sm:$0xff] }
 0x19f   :  { %1089 = vst.msk [vmem:[%s3269_s8 + $0xc0] sm:$0xff] %vm66_vm0, %v1042_v45  ;;  %v186_v46 = vmul.f32 %v1736_v34, %v117_v48  ;;  %v372_v4 = vmul.f32 %v298_v57, %v1736_v34 }
 0x1a0   :  { %v2508_v6 = vpop.eup %1560  ;;  %v510_v41 = vsub.f32 1.5, %v509_v14  ;;  %1066 = vst.msk [vmem:[%s3269_s8 + $0x8] sm:$0xff] %vm66_vm0, %v973_v15  ;;  %v2517_v16 = vadd.f32 %v1983_v17, %v812_v35 }
 0x1a1   :  { %v517_v0 = vmul.f32 %v2508_v6, %v2485_v12  ;;  %v2527_v10 = vsub.f32 %v2240_v42, %v186_v46  ;;  %v2529_v55 = vadd.f32 1e-05, %v372_v4  ;;  %vm523_vm8 = vweird.f32 %v2508_v6 }
 0x1a2   :  { %v511_v49 = vmul.f32 %v1559_v22, %v510_v41  ;;  %1442 = vmatmul.msk.f32.gmra.mxu3 %vm66_vm0, %v2517_v16  ;;  %vm524_vm10 = vmor %vm522_vm9, %vm523_vm8 }
 0x1a3   :  { %v518_v63 = vmul.f32 %v2508_v6, %v517_v0  ;;  %1562 = vrsqrt.f32 %v2529_v55  ;;  %v1274_v39 = vpop.f32.mrf.mxu2  ;;  %v250_v42 = vmul.f32 %v2527_v10, %v2527_v10  ;;  %vm532_vm11 = vweird.f32 %v2529_v55 }
 0x1a4   :  { %v515_v19 = vsel %vm514_vm7, %v1559_v22, %v511_v49  ;;  %v1044_v18 = vpop.f32.mrf.mxu3  ;;  %v1275_v44 = vadd.f32 %v2460_v37, %v1274_v39 }
 0x1a5   :  { %v301_v59 = vpop.xlane.xlu2 %300  ;;  %v519_v3 = vmul.f32 0.5, %v518_v63  ;;  %v754_v23 = vmul.f32 %v515_v19, %v2073_v36  ;;  %v1045_v21 = vadd.f32 %v2443_v61, %v1044_v18  ;;  %v314_v27 = vsel %vm66_vm0, %v250_v42, 0.0 }
 0x1a6   :  { %v373_v47 = vmul.f32 %v301_v59, %v1736_v34  ;;  %134 = vadd.xlane.f32.xlu1 %v133_v31  ;;  %1368 = vst.msk [vmem:[%s3270_s10 + $0x8] sm:$0xff] %vm66_vm0, %v1275_v44  ;;  %v975_v62 = vpop.f32.mrf.mxu0  ;;  %315 = vadd.xlane.f32.xlu0 %v314_v27  ;;  %v120_v56 = vpop.xlane.xlu0 %119 }
 0x1a7   :  { %v520_v22 = vsub.f32 1.5, %v519_v3  ;;  %v789_v36 = vmul.f32 %v1973_v5, %v754_v23  ;;  %1090 = vst.msk [vmem:[%s3269_s8 + $0xc8] sm:$0xff] %vm66_vm0, %v1045_v21  ;;  %v976_v30 = vadd.f32 %v2443_v61, %v975_v62  ;;  %v1124_v11 = vpop.f32.mrf.mxu1  ;;  %v187_v45 = vmul.f32 %v1736_v34, %v120_v56 }
 0x1a8   :  { %v2550_v40 = vadd.f32 1e-05, %v373_v47  ;;  %1216 = vst.msk [vmem:[%s3268_s9 + $0x10] sm:$0xff] %vm66_vm0, %v1124_v11 }
 0x1a9   :  { %v521_v25 = vmul.f32 %v2508_v6, %v520_v22  ;;  %v824_v38 = vadd.f32 %v1983_v17, %v789_v36  ;;  %v2572_v14 = vpop.eup %1562  ;;  %1067 = vst.msk [vmem:[%s3269_s8 + $0x10] sm:$0xff] %vm66_vm0, %v976_v30  ;;  %v2581_v12 = vsub.f32 %v2296_v51, %v187_v45  ;;  %v136_v51 = vsel %vm66_vm0, %v2570_v52, 0.0 }
 0x1aa   :  { %1564 = vrsqrt.f32 %v2550_v40  ;;  %1467 = vmatmul.msk.f32.vlgmr.msrb.gmra.mxu3 %vm66_vm0, %v2099_v28  ;;  %v527_v35 = vmul.f32 %v2572_v14, %v2529_v55  ;;  %vm533_vm12 = vweird.f32 %v2572_v14  ;;  %vm542_vm14 = vweird.f32 %v2550_v40 }
 0x1ab   :  { %v525_v15 = vsel %vm524_vm10, %v2508_v6, %v521_v25  ;;  %1419 = vmatmul.msk.f32.gmra.mxu0 %vm66_vm0, %v824_v38  ;;  %1451 = vmatmul.msk.f32.gmra.mxu1 %vm66_vm0, %v824_v38  ;;  %v251_v46 = vmul.f32 %v2581_v12, %v2581_v12  ;;  %vm2631_vm13 = vmor %vm532_vm11, %vm533_vm12 }
 0x1ac   :  { %1483 = vmatmul.msk.f32.gmra.mxu2 %vm66_vm0, %v824_v38  ;;  %v755_v6 = vmul.f32 %v525_v15, %v2149_v60  ;;  %v528_v4 = vmul.f32 %v2572_v14, %v527_v35  ;;  %v1047_v0 = vpop.f32.mrf.mxu3 }
 0x1ad   :  { %v304_v48 = vpop.xlane.xlu1 %303  ;;  %v123_v41 = vpop.xlane.xlu2 %122  ;;  %v1048_v63 = vadd.f32 %v2443_v61, %v1047_v0  ;;  %v317_v39 = vsel %vm66_vm0, %v251_v46, 0.0 }
 0x1ae   :  { %v374_v57 = vmul.f32 %v304_v48, %v1736_v34  ;;  %v188_v49 = vmul.f32 %v1736_v34, %v123_v41  ;;  %v1277_v31 = vpop.f32.mrf.mxu2  ;;  %v790_v42 = vmul.f32 %v1973_v5, %v755_v6  ;;  %v529_v3 = vmul.f32 0.5, %v528_v4  ;;  %v978_v18 = vpop.f32.mrf.mxu0  ;;  %137 = vadd.xlane.f32.xlu0 %v136_v51  ;;  %318 = vadd.xlane.f32.xlu2 %v317_v39 }
 0x1af   :  { %v1278_v60 = vadd.f32 %v2460_v37, %v1277_v31  ;;  %1091 = vst.msk [vmem:[%s3269_s8 + $0xd0] sm:$0xff] %vm66_vm0, %v1048_v63  ;;  %v979_v5 = vadd.f32 %v2443_v61, %v978_v18  ;;  %v1127_v23 = vpop.f32.mrf.mxu1 }
 0x1b0   :  { %v2601_v19 = vadd.f32 1e-05, %v374_v57  ;;  %v2605_v59 = vpop.eup %1564  ;;  %v2610_v44 = vsub.f32 %v2347_v58, %v188_v49  ;;  %v530_v21 = vsub.f32 1.5, %v529_v3  ;;  %v825_v58 = vadd.f32 %v1983_v17, %v790_v42  ;;  %1217 = vst.msk [vmem:[%s3268_s9 + $0x18] sm:$0xff] %vm66_vm0, %v1127_v23 }
 0x1b1   :  { %v537_v47 = vmul.f32 %v2605_v59, %v2550_v40  ;;  %1369 = vst.msk [vmem:[%s3270_s10 + $0x10] sm:$0xff] %vm66_vm0, %v1278_v60  ;;  %vm543_vm15 = vweird.f32 %v2605_v59 }
 0x1b2   :  { %1566 = vrsqrt.f32 %v2601_v19  ;;  %v252_v27 = vmul.f32 %v2610_v44, %v2610_v44  ;;  %1068 = vst.msk [vmem:[%s3269_s8 + $0x18] sm:$0xff] %vm66_vm0, %v979_v5  ;;  %1468 = vmatmul.msk.f32.gmra.mxu3 %vm66_vm0, %v2175_v50  ;;  %v531_v17 = vmul.f32 %v2572_v14, %v530_v21  ;;  %vm2666_vm1 = vmor %vm542_vm14, %vm543_vm15  ;;  %vm552_vm2 = vweird.f32 %v2601_v19 }
 0x1b3   :  { %v538_v62 = vmul.f32 %v2605_v59, %v537_v47  ;;  %1420 = vmatmul.msk.f32.gmra.mxu0 %vm66_vm0, %v825_v58  ;;  %1452 = vmatmul.msk.f32.gmra.mxu1 %vm66_vm0, %v825_v58 }
 0x1b4   :  { %v320_v56 = vsel %vm66_vm0, %v252_v27, 0.0  ;;  %1484 = vmatmul.msk.f32.gmra.mxu2 %vm66_vm0, %v825_v58  ;;  %v535_v25 = vsel %vm2631_vm13, %v2572_v14, %v531_v17  ;;  %v1050_v38 = vpop.f32.mrf.mxu3 }
 0x1b5   :  { %v126_v55 = vpop.xlane.xlu1 %125  ;;  %v307_v36 = vpop.xlane.xlu0 %306  ;;  %v539_v30 = vmul.f32 0.5, %v538_v62  ;;  %321 = vadd.xlane.f32.xlu1 %v320_v56  ;;  %v1051_v48 = vadd.f32 %v2443_v61, %v1050_v38  ;;  %v756_v0 = vmul.f32 %v535_v25, %v2221_v54  ;;  %v2687_v54 = vld [vmem:[%s3261_s1] ss:$0 sm:$0xff] }
 0x1b6   :  { %v189_v11 = vmul.f32 %v1736_v34, %v126_v55  ;;  %v375_v45 = vmul.f32 %v307_v36, %v1736_v34  ;;  %v1280_v57 = vpop.f32.mrf.mxu2  ;;  %v981_v4 = vpop.f32.mrf.mxu0 }
 0x1b7   :  { %v540_v35 = vsub.f32 1.5, %v539_v30  ;;  %v1281_v14 = vadd.f32 %v2460_v37, %v1280_v57  ;;  %1092 = vst.msk [vmem:[%s3269_s8 + $0xd8] sm:$0xff] %vm66_vm0, %v1051_v48  ;;  %v791_v31 = vmul.f32 %v2687_v54, %v756_v0 }
 0x1b8   :  { %v1567_v15 = vpop.eup %1566  ;;  %v2660_v51 = vsub.f32 %v2389_v32, %v189_v11  ;;  %v2662_v41 = vadd.f32 1e-05, %v375_v45  ;;  %v982_v32 = vadd.f32 %v2443_v61, %v981_v4  ;;  %v1130_v40 = vpop.f32.mrf.mxu1 }
 0x1b9   :  { %v547_v6 = vmul.f32 %v1567_v15, %v2601_v19  ;;  %v541_v49 = vmul.f32 %v2605_v59, %v540_v35  ;;  %1370 = vst.msk [vmem:[%s3270_s10 + $0x18] sm:$0xff] %vm66_vm0, %v1281_v14  ;;  %vm553_vm3 = vweird.f32 %v1567_v15 }
 0x1ba   :  { %1568 = vrsqrt.f32 %v2662_v41  ;;  %v253_v39 = vmul.f32 %v2660_v51, %v2660_v51  ;;  %1069 = vst.msk [vmem:[%s3269_s8 + $0x20] sm:$0xff] %vm66_vm0, %v982_v32  ;;  %1469 = vmatmul.msk.f32.gmra.mxu3 %vm66_vm0, %v2255_v29  ;;  %vm2721_vm4 = vmor %vm552_vm2, %vm553_vm3  ;;  %vm562_vm5 = vweird.f32 %v2662_v41 }
 0x1bb   :  { %v548_v63 = vmul.f32 %v1567_v15, %v547_v6  ;;  %v545_v42 = vsel %vm2666_vm1, %v2605_v59, %v541_v49  ;;  %1218 = vst.msk [vmem:[%s3268_s9 + $0x20] sm:$0xff] %vm66_vm0, %v1130_v40  ;;  %v2709_v59 = vld [vmem:[%s3262_s2] ss:$0 sm:$0xff] }
 0x1bc   :  { %v826_v60 = vadd.f32 %v2709_v59, %v791_v31  ;;  %v323_v18 = vsel %vm66_vm0, %v253_v39, 0.0  ;;  %v757_v5 = vmul.f32 %v545_v42, %v2289_v13  ;;  %v1053_v58 = vpop.f32.mrf.mxu3 }
 0x1bd   :  { %v549_v3 = vmul.f32 0.5, %v548_v63  ;;  %v129_v47 = vpop.xlane.xlu0 %128  ;;  %324 = vadd.xlane.f32.xlu2 %v323_v18  ;;  %v1054_v13 = vadd.f32 %v2443_v61, %v1053_v58 }
 0x1be   :  { %v190_v23 = vmul.f32 %v1736_v34, %v129_v47  ;;  %1421 = vmatmul.msk.f32.gmra.mxu0 %vm66_vm0, %v826_v60  ;;  %1453 = vmatmul.msk.f32.gmra.mxu1 %vm66_vm0, %v826_v60  ;;  %v792_v27 = vmul.f32 %v2687_v54, %v757_v5  ;;  %v1283_v17 = vpop.f32.mrf.mxu2  ;;  %v984_v11 = vpop.f32.mrf.mxu0 }
 0x1bf   :  { %v550_v21 = vsub.f32 1.5, %v549_v3  ;;  %1485 = vmatmul.msk.f32.gmra.mxu2 %vm66_vm0, %v826_v60  ;;  %v1284_v30 = vadd.f32 %v2460_v37, %v1283_v17  ;;  %1093 = vst.msk [vmem:[%s3269_s8 + $0xe0] sm:$0xff] %vm66_vm0, %v1054_v13  ;;  %v985_v19 = vadd.f32 %v2443_v61, %v984_v11 }
 0x1c0   :  { %v1569_v22 = vpop.eup %1568  ;;  %v2728_v55 = vsub.f32 %v2421_v24, %v190_v23  ;;  %v1133_v45 = vpop.f32.mrf.mxu1  ;;  %v827_v35 = vadd.f32 %v2709_v59, %v792_v27 }
 0x1c1   :  { %v551_v56 = vmul.f32 %v1567_v15, %v550_v21  ;;  %v557_v36 = vmul.f32 %v1569_v22, %v2662_v41  ;;  %1371 = vst.msk [vmem:[%s3270_s10 + $0x20] sm:$0xff] %vm66_vm0, %v1284_v30  ;;  %vm563_vm6 = vweird.f32 %v1569_v22 }
 0x1c2   :  { %v254_v25 = vmul.f32 %v2728_v55, %v2728_v55  ;;  %1070 = vst.msk [vmem:[%s3269_s8 + $0x28] sm:$0xff] %vm66_vm0, %v985_v19  ;;  %1470 = vmatmul.msk.f32.gmra.mxu3 %vm66_vm0, %v2316_v53  ;;  %vm564_vm7 = vmor %vm562_vm5, %vm563_vm6 }
 0x1c3   :  { %v555_v24 = vsel %vm2721_vm4, %v1567_v15, %v551_v56  ;;  %v558_v38 = vmul.f32 %v1569_v22, %v557_v36  ;;  %1219 = vst.msk [vmem:[%s3268_s9 + $0x28] sm:$0xff] %vm66_vm0, %v1133_v45 }
 0x1c4   :  { %v326_v48 = vsel %vm66_vm0, %v254_v25, 0.0  ;;  %v758_v15 = vmul.f32 %v555_v24, %v2342_v26  ;;  %v1056_v6 = vpop.f32.mrf.mxu3 }
 0x1c5   :  { %v559_v57 = vmul.f32 0.5, %v558_v38  ;;  %327 = vadd.xlane.f32.xlu0 %v326_v48  ;;  %v1057_v26 = vadd.f32 %v2443_v61, %v1056_v6 }
 0x1c6   :  { %1422 = vmatmul.msk.f32.gmra.mxu0 %vm66_vm0, %v827_v35  ;;  %1454 = vmatmul.msk.f32.gmra.mxu1 %vm66_vm0, %v827_v35  ;;  %v793_v14 = vmul.f32 %v2687_v54, %v758_v15  ;;  %v1286_v4 = vpop.f32.mrf.mxu2  ;;  %v987_v49 = vpop.f32.mrf.mxu0 }
 0x1c7   :  { %v560_v46 = vsub.f32 1.5, %v559_v57  ;;  %1486 = vmatmul.msk.f32.gmra.mxu2 %vm66_vm0, %v827_v35  ;;  %v1287_v0 = vadd.f32 %v2460_v37, %v1286_v4  ;;  %1094 = vst.msk [vmem:[%s3269_s8 + $0xe8] sm:$0xff] %vm66_vm0, %v1057_v26  ;;  %v988_v32 = vadd.f32 %v2443_v61, %v987_v49 }
 0x1c8   :  { %v1136_v40 = vpop.f32.mrf.mxu1  ;;  %v828_v31 = vadd.f32 %v2709_v59, %v793_v14 }
 0x1c9   :  { %v561_v41 = vmul.f32 %v1569_v22, %v560_v46  ;;  %1372 = vst.msk [vmem:[%s3270_s10 + $0x28] sm:$0xff] %vm66_vm0, %v1287_v0 }
 0x1ca   :  { %1071 = vst.msk [vmem:[%s3269_s8 + $0x30] sm:$0xff] %vm66_vm0, %v988_v32  ;;  %1471 = vmatmul.msk.f32.gmra.mxu3 %vm66_vm0, %v2369_v8 }
 0x1cb   :  { %v565_v63 = vsel %vm564_vm7, %v1569_v22, %v561_v41  ;;  %1220 = vst.msk [vmem:[%s3268_s9 + $0x30] sm:$0xff] %vm66_vm0, %v1136_v40 }
 0x1cc   :  { %v759_v39 = vmul.f32 %v565_v63, %v2394_v1  ;;  %v1059_v42 = vpop.f32.mrf.mxu3 }
 0x1cd   :  { %v1060_v60 = vadd.f32 %v2443_v61, %v1059_v42 }
 0x1ce   :  { %1423 = vmatmul.msk.f32.gmra.mxu0 %vm66_vm0, %v828_v31  ;;  %1455 = vmatmul.msk.f32.gmra.mxu1 %vm66_vm0, %v828_v31  ;;  %v794_v3 = vmul.f32 %v2687_v54, %v759_v39  ;;  %v1289_v18 = vpop.f32.mrf.mxu2 }
 0x1cf   :  { %1487 = vmatmul.msk.f32.gmra.mxu2 %vm66_vm0, %v828_v31  ;;  %v1290_v47 = vadd.f32 %v2460_v37, %v1289_v18  ;;  %1095 = vst.msk [vmem:[%s3269_s8 + $0xf0] sm:$0xff] %vm66_vm0, %v1060_v60 }
 0x1d0   :  { %v829_v1 = vadd.f32 %v2709_v59, %v794_v3 }
 0x1d1   :  { %1373 = vst.msk [vmem:[%s3270_s10 + $0x30] sm:$0xff] %vm66_vm0, %v1290_v47 }
 0x1d2   :  { %1472 = vmatmul.msk.f32.gmra.mxu3 %vm66_vm0, %v2411_v9 }
 0x1d6   :  { %1424 = vmatmul.msk.f32.gmra.mxu0 %vm66_vm0, %v829_v1  ;;  %1456 = vmatmul.msk.f32.gmra.mxu1 %vm66_vm0, %v829_v1 }
 0x1d7   :  { %1488 = vmatmul.msk.f32.gmra.mxu2 %vm66_vm0, %v829_v1 }
 0x1da   :  { %1473 = vmatmul.msk.f32.gmra.mxu3 %vm66_vm0, %v2431_v7 }
 0x1e2   :  { %1474 = vmatmul.msk.f32.gmra.mxu3 %vm66_vm0, %v2517_v16 }
 0x1ea   :  { %1499 = vmatmul.msk.f32.vlgmr.msra.gmra.mxu3 %vm66_vm0, %v2099_v28 }
 0x1f2   :  { %1500 = vmatmul.msk.f32.gmra.mxu3 %vm66_vm0, %v2175_v50 }
 0x1fa   :  { %1501 = vmatmul.msk.f32.gmra.mxu3 %vm66_vm0, %v2255_v29 }
 0x202   :  { %1502 = vmatmul.msk.f32.gmra.mxu3 %vm66_vm0, %v2316_v53 }
 0x208   :  { %v310_v5 = vpop.xlane.xlu2 %309 }
 0x209   :  { %v376_v23 = vmul.f32 %v310_v5, %v1736_v34 }
 0x20a   :  { %1503 = vmatmul.msk.f32.gmra.mxu3 %vm66_vm0, %v2369_v8 }
 0x20b   :  { %v408_v21 = vadd.f32 1e-05, %v376_v23 }
 0x20d   :  { %1570 = vrsqrt.f32 %v408_v21  ;;  %vm572_vm9 = vweird.f32 %v408_v21 }
 0x20e   :  { %v990_v58 = vpop.f32.mrf.mxu0  ;;  %v1139_v27 = vpop.f32.mrf.mxu1 }
 0x20f   :  { %v991_v28 = vadd.f32 %v2443_v61, %v990_v58  ;;  %1221 = vst.msk [vmem:[%s3268_s9 + $0x38] sm:$0xff] %vm66_vm0, %v1139_v27 }
 0x210   :  { %v132_v50 = vpop.xlane.xlu2 %131 }
 0x211   :  { %1072 = vst.msk [vmem:[%s3269_s8 + $0x38] sm:$0xff] %vm66_vm0, %v991_v28  ;;  %v313_v29 = vpop.xlane.xlu1 %312  ;;  %v191_v53 = vmul.f32 %v1736_v34, %v132_v50 }
 0x212   :  { %v377_v8 = vmul.f32 %v313_v29, %v1736_v34  ;;  %1504 = vmatmul.msk.f32.gmra.mxu3 %vm66_vm0, %v2411_v9 }
 0x213   :  { %v1571_v22 = vpop.eup %1570  ;;  %v2835_v62 = vsub.f32 %v2483_v43, %v191_v53 }
 0x214   :  { %v567_v17 = vmul.f32 %v1571_v22, %v408_v21  ;;  %v409_v56 = vadd.f32 1e-05, %v377_v8  ;;  %vm573_vm8 = vweird.f32 %v1571_v22 }
 0x215   :  { %v1292_v13 = vpop.f32.mrf.mxu2  ;;  %v255_v30 = vmul.f32 %v2835_v62, %v2835_v62  ;;  %vm574_vm10 = vmor %vm572_vm9, %vm573_vm8 }
 0x216   :  { %v1293_v36 = vadd.f32 %v2460_v37, %v1292_v13  ;;  %v568_v11 = vmul.f32 %v1571_v22, %v567_v17  ;;  %1572 = vrsqrt.f32 %v409_v56  ;;  %vm582_vm12 = vweird.f32 %v409_v56 }
 0x217   :  { %v329_v9 = vsel %vm66_vm0, %v255_v30, 0.0 }
 0x218   :  { %1374 = vst.msk [vmem:[%s3270_s10 + $0x38] sm:$0xff] %vm66_vm0, %v1293_v36  ;;  %v569_v19 = vmul.f32 0.5, %v568_v11  ;;  %330 = vadd.xlane.f32.xlu1 %v329_v9 }
 0x219   :  { %v135_v43 = vpop.xlane.xlu1 %134  ;;  %v316_v24 = vpop.xlane.xlu0 %315 }
 0x21a   :  { %v570_v45 = vsub.f32 1.5, %v569_v19  ;;  %v192_v25 = vmul.f32 %v1736_v34, %v135_v43  ;;  %1505 = vmatmul.msk.f32.gmra.mxu3 %vm66_vm0, %v2431_v7  ;;  %v378_v38 = vmul.f32 %v316_v24, %v1736_v34 }
 0x21c   :  { %v1573_v35 = vpop.eup %1572  ;;  %v571_v48 = vmul.f32 %v1571_v22, %v570_v45  ;;  %v2850_v15 = vsub.f32 %v2522_v33, %v192_v25  ;;  %v410_v46 = vadd.f32 1e-05, %v378_v38 }
 0x21d   :  { %v577_v57 = vmul.f32 %v1573_v35, %v409_v56  ;;  %vm583_vm11 = vweird.f32 %v1573_v35 }
 0x21e   :  { %v575_v6 = vsel %vm574_vm10, %v1571_v22, %v571_v48  ;;  %v256_v14 = vmul.f32 %v2850_v15, %v2850_v15  ;;  %1574 = vrsqrt.f32 %v410_v46  ;;  %vm584_vm13 = vmor %vm582_vm12, %vm583_vm11  ;;  %vm592_vm15 = vweird.f32 %v410_v46 }
 0x21f   :  { %v578_v26 = vmul.f32 %v1573_v35, %v577_v57  ;;  %v760_v4 = vmul.f32 %v575_v6, %v2467_v20 }
 0x220   :  { %v332_v7 = vsel %vm66_vm0, %v256_v14, 0.0 }
 0x221   :  { %v579_v41 = vmul.f32 0.5, %v578_v26  ;;  %333 = vadd.xlane.f32.xlu2 %v332_v7  ;;  %v795_v0 = vmul.f32 %v2687_v54, %v760_v4  ;;  %v319_v33 = vpop.xlane.xlu2 %318  ;;  %v138_v49 = vpop.xlane.xlu0 %137 }
 0x222   :  { %1506 = vmatmul.msk.f32.gmra.mxu3 %vm66_vm0, %v2517_v16  ;;  %v379_v40 = vmul.f32 %v319_v33, %v1736_v34  ;;  %v193_v63 = vmul.f32 %v1736_v34, %v138_v49 }
 0x223   :  { %v580_v32 = vsub.f32 1.5, %v579_v41  ;;  %v830_v31 = vadd.f32 %v2709_v59, %v795_v0 }
 0x224   :  { %v1575_v20 = vpop.eup %1574  ;;  %v2862_v42 = vadd.f32 1e-05, %v379_v40  ;;  %v2865_v3 = vsub.f32 %v2570_v52, %v193_v63 }
 0x225   :  { %v581_v39 = vmul.f32 %v1573_v35, %v580_v32  ;;  %1425 = vmatmul.msk.f32.gmra.mxu0 %vm66_vm0, %v830_v31  ;;  %v1062_v60 = vpop.f32.mrf.mxu3  ;;  %1457 = vmatmul.msk.f32.gmra.mxu1 %vm66_vm0, %v830_v31  ;;  %v587_v16 = vmul.f32 %v1575_v20, %v410_v46  ;;  %vm593_vm14 = vweird.f32 %v1575_v20 }
 0x226   :  { %v1063_v18 = vadd.f32 %v2443_v61, %v1062_v60  ;;  %1489 = vmatmul.msk.f32.gmra.mxu2 %vm66_vm0, %v830_v31  ;;  %1576 = vrsqrt.f32 %v2862_v42  ;;  %v257_v52 = vmul.f32 %v2865_v3, %v2865_v3  ;;  %vm594_vm1 = vmor %vm592_vm15, %vm593_vm14  ;;  %vm602_vm2 = vweird.f32 %v2862_v42 }
 0x227   :  { %v585_v47 = vsel %vm584_vm13, %v1573_v35, %v581_v39  ;;  %v588_v5 = vmul.f32 %v1575_v20, %v587_v16 }
 0x228   :  { %v322_v1 = vpop.xlane.xlu1 %321  ;;  %1096 = vst.msk [vmem:[%s3269_s8 + $0xf8] sm:$0xff] %vm66_vm0, %v1063_v18  ;;  %v993_v23 = vpop.f32.mrf.mxu0  ;;  %v761_v27 = vmul.f32 %v585_v47, %v2488_v2  ;;  %v335_v50 = vsel %vm66_vm0, %v257_v52, 0.0 }
 0x229   :  { %v1142_v21 = vpop.f32.mrf.mxu1  ;;  %v380_v58 = vmul.f32 %v322_v1, %v1736_v34  ;;  %v994_v28 = vadd.f32 %v2443_v61, %v993_v23  ;;  %v589_v29 = vmul.f32 0.5, %v588_v5  ;;  %336 = vadd.xlane.f32.xlu0 %v335_v50 }
 0x22a   :  { %1222 = vst.msk [vmem:[%s3268_s9 + $0x40] sm:$0xff] %vm66_vm0, %v1142_v21  ;;  %v796_v8 = vmul.f32 %v2687_v54, %v761_v27 }
 0x22b   :  { %v412_v53 = vadd.f32 1e-05, %v380_v58  ;;  %1073 = vst.msk [vmem:[%s3269_s8 + $0x40] sm:$0xff] %vm66_vm0, %v994_v28  ;;  %v590_v2 = vsub.f32 1.5, %v589_v29 }
 0x22c   :  { %v831_v22 = vadd.f32 %v2709_v59, %v796_v8  ;;  %v1577_v13 = vpop.eup %1576 }
 0x22d   :  { %1578 = vrsqrt.f32 %v412_v53  ;;  %v1190_v17 = vpop.f32.mrf.mxu3  ;;  %v591_v56 = vmul.f32 %v1575_v20, %v590_v2  ;;  %v597_v36 = vmul.f32 %v1577_v13, %v2862_v42  ;;  %vm603_vm3 = vweird.f32 %v1577_v13 }
 0x22e   :  { %1426 = vmatmul.msk.f32.gmra.mxu0 %vm66_vm0, %v831_v22  ;;  %1458 = vmatmul.msk.f32.gmra.mxu1 %vm66_vm0, %v831_v22  ;;  %1238 = vst.msk [vmem:[%s3268_s9 + $0xc0] sm:$0xff] %vm66_vm0, %v1190_v17  ;;  %vm2919_vm4 = vmor %vm602_vm2, %vm603_vm3  ;;  %vm612_vm5 = vweird.f32 %v412_v53 }
 0x22f   :  { %v1295_v30 = vpop.f32.mrf.mxu2  ;;  %1490 = vmatmul.msk.f32.gmra.mxu2 %vm66_vm0, %v831_v22  ;;  %v595_v9 = vsel %vm594_vm1, %v1575_v20, %v591_v56  ;;  %v598_v19 = vmul.f32 %v1577_v13, %v597_v36 }
 0x230   :  { %v325_v11 = vpop.xlane.xlu2 %324  ;;  %v1296_v43 = vadd.f32 %v2460_v37, %v1295_v30  ;;  %v996_v45 = vpop.f32.mrf.mxu0  ;;  %v762_v35 = vmul.f32 %v595_v9, %v2527_v10 }
 0x231   :  { %v1145_v25 = vpop.f32.mrf.mxu1  ;;  %v381_v24 = vmul.f32 %v325_v11, %v1736_v34  ;;  %v997_v38 = vadd.f32 %v2443_v61, %v996_v45  ;;  %v599_v57 = vmul.f32 0.5, %v598_v19 }
 0x232   :  { %1223 = vst.msk [vmem:[%s3268_s9 + $0x48] sm:$0xff] %vm66_vm0, %v1145_v25  ;;  %v797_v14 = vmul.f32 %v2687_v54, %v762_v35 }
 0x233   :  { %v1579_v48 = vpop.eup %1578  ;;  %1375 = vst.msk [vmem:[%s3270_s10 + $0x40] sm:$0xff] %vm66_vm0, %v1296_v43  ;;  %v413_v46 = vadd.f32 1e-05, %v381_v24  ;;  %v600_v10 = vsub.f32 1.5, %v599_v57 }
 0x234   :  { %v607_v6 = vmul.f32 %v1579_v48, %v412_v53  ;;  %1074 = vst.msk [vmem:[%s3269_s8 + $0x48] sm:$0xff] %vm66_vm0, %v997_v38  ;;  %v832_v7 = vadd.f32 %v2709_v59, %v797_v14  ;;  %vm613_vm6 = vweird.f32 %v1579_v48 }
 0x235   :  { %1580 = vrsqrt.f32 %v413_v46  ;;  %v1193_v41 = vpop.f32.mrf.mxu3  ;;  %v601_v0 = vmul.f32 %v1577_v13, %v600_v10  ;;  %vm2936_vm7 = vmor %vm612_vm5, %vm613_vm6  ;;  %vm622_vm8 = vweird.f32 %v413_v46 }
 0x236   :  { %v608_v4 = vmul.f32 %v1579_v48, %v607_v6  ;;  %1239 = vst.msk [vmem:[%s3268_s9 + $0xc8] sm:$0xff] %vm66_vm0, %v1193_v41  ;;  %1427 = vmatmul.msk.f32.gmra.mxu0 %vm66_vm0, %v832_v7  ;;  %1459 = vmatmul.msk.f32.gmra.mxu1 %vm66_vm0, %v832_v7 }
 0x237   :  { %v1298_v32 = vpop.f32.mrf.mxu2  ;;  %v605_v63 = vsel %vm2919_vm4, %v1577_v13, %v601_v0  ;;  %1491 = vmatmul.msk.f32.gmra.mxu2 %vm66_vm0, %v832_v7 }
 0x238   :  { %v328_v33 = vpop.xlane.xlu0 %327  ;;  %v609_v49 = vmul.f32 0.5, %v608_v4  ;;  %v1299_v31 = vadd.f32 %v2460_v37, %v1298_v32  ;;  %v763_v42 = vmul.f32 %v605_v63, %v2581_v12 }
 0x239   :  { %v382_v40 = vmul.f32 %v328_v33, %v1736_v34 }
 0x23a   :  { %v610_v20 = vsub.f32 1.5, %v609_v49  ;;  %1376 = vst.msk [vmem:[%s3270_s10 + $0x48] sm:$0xff] %vm66_vm0, %v1299_v31  ;;  %v798_v12 = vmul.f32 %v2687_v54, %v763_v42 }
 0x23b   :  { %v414_v39 = vadd.f32 1e-05, %v382_v40  ;;  %v1581_v60 = vpop.eup %1580  ;;  %v999_v18 = vpop.f32.mrf.mxu0 }
 0x23c   :  { %v1148_v47 = vpop.f32.mrf.mxu1  ;;  %v611_v1 = vmul.f32 %v1579_v48, %v610_v20  ;;  %v617_v52 = vmul.f32 %v1581_v60, %v413_v46  ;;  %v1000_v5 = vadd.f32 %v2443_v61, %v999_v18  ;;  %v833_v27 = vadd.f32 %v2709_v59, %v798_v12 }
 0x23d   :  { %1224 = vst.msk [vmem:[%s3268_s9 + $0x50] sm:$0xff] %vm66_vm0, %v1148_v47  ;;  %1582 = vrsqrt.f32 %v414_v39  ;;  %v1196_v58 = vpop.f32.mrf.mxu3  ;;  %vm623_vm9 = vweird.f32 %v1581_v60  ;;  %vm632_vm11 = vweird.f32 %v414_v39 }
 0x23e   :  { %v615_v23 = vsel %vm2936_vm7, %v1579_v48, %v611_v1  ;;  %v618_v21 = vmul.f32 %v1581_v60, %v617_v52  ;;  %1075 = vst.msk [vmem:[%s3269_s8 + $0x50] sm:$0xff] %vm66_vm0, %v1000_v5  ;;  %1428 = vmatmul.msk.f32.gmra.mxu0 %vm66_vm0, %v833_v27  ;;  %1460 = vmatmul.msk.f32.gmra.mxu1 %vm66_vm0, %v833_v27  ;;  %vm624_vm10 = vmor %vm622_vm8, %vm623_vm9 }
 0x23f   :  { %1240 = vst.msk [vmem:[%s3268_s9 + $0xd0] sm:$0xff] %vm66_vm0, %v1196_v58  ;;  %v764_v28 = vmul.f32 %v615_v23, %v2610_v44  ;;  %1492 = vmatmul.msk.f32.gmra.mxu2 %vm66_vm0, %v833_v27 }
 0x240   :  { %v619_v50 = vmul.f32 0.5, %v618_v21 }
 0x241   :  { %v799_v29 = vmul.f32 %v2687_v54, %v764_v28 }
 0x242   :  { %v620_v53 = vsub.f32 1.5, %v619_v50  ;;  %v1301_v8 = vpop.f32.mrf.mxu2 }
 0x243   :  { %v1583_v2 = vpop.eup %1582  ;;  %v1302_v22 = vadd.f32 %v2460_v37, %v1301_v8  ;;  %v1002_v13 = vpop.f32.mrf.mxu0  ;;  %v834_v30 = vadd.f32 %v2709_v59, %v799_v29 }
 0x244   :  { %v1151_v17 = vpop.f32.mrf.mxu1  ;;  %v621_v44 = vmul.f32 %v1581_v60, %v620_v53  ;;  %v627_v56 = vmul.f32 %v1583_v2, %v414_v39  ;;  %v1003_v36 = vadd.f32 %v2443_v61, %v1002_v13  ;;  %vm633_vm12 = vweird.f32 %v1583_v2 }
 0x245   :  { %1225 = vst.msk [vmem:[%s3268_s9 + $0x58] sm:$0xff] %vm66_vm0, %v1151_v17  ;;  %v1199_v19 = vpop.f32.mrf.mxu3  ;;  %vm634_vm13 = vmor %vm632_vm11, %vm633_vm12 }
 0x246   :  { %1377 = vst.msk [vmem:[%s3270_s10 + $0x50] sm:$0xff] %vm66_vm0, %v1302_v22  ;;  %v625_v11 = vsel %vm624_vm10, %v1581_v60, %v621_v44  ;;  %v628_v9 = vmul.f32 %v1583_v2, %v627_v56  ;;  %1429 = vmatmul.msk.f32.gmra.mxu0 %vm66_vm0, %v834_v30  ;;  %1461 = vmatmul.msk.f32.gmra.mxu1 %vm66_vm0, %v834_v30  ;;  %v3057_v60 = vld [vmem:[%s3267_s7] ss:$0 sm:$0xff] }
 0x247   :  { %1076 = vst.msk [vmem:[%s3269_s8 + $0x58] sm:$0xff] %vm66_vm0, %v1003_v36  ;;  %v765_v43 = vmul.f32 %v625_v11, %v2660_v51  ;;  %1493 = vmatmul.msk.f32.gmra.mxu2 %vm66_vm0, %v834_v30 }
 0x248   :  { %1241 = vst.msk [vmem:[%s3268_s9 + $0xd8] sm:$0xff] %vm66_vm0, %v1199_v19  ;;  %v629_v45 = vmul.f32 0.5, %v628_v9 }
 0x249   :  { %v800_v25 = vmul.f32 %v2687_v54, %v765_v43 }
 0x24a   :  { %v630_v24 = vsub.f32 1.5, %v629_v45  ;;  %v1304_v38 = vpop.f32.mrf.mxu2 }
 0x24b   :  { %v1305_v35 = vadd.f32 %v2460_v37, %v1304_v38  ;;  %v1005_v48 = vpop.f32.mrf.mxu0  ;;  %v835_v6 = vadd.f32 %v2709_v59, %v800_v25  ;;  %v3096_v38 = vld [vmem:[%s3266_s4] ss:$0 sm:$0xff] }
 0x24c   :  { %v1154_v57 = vpop.f32.mrf.mxu1  ;;  %v631_v46 = vmul.f32 %v1583_v2, %v630_v24  ;;  %v1006_v51 = vadd.f32 %v2443_v61, %v1005_v48 }
 0x24d   :  { %1226 = vst.msk [vmem:[%s3268_s9 + $0x60] sm:$0xff] %vm66_vm0, %v1154_v57  ;;  %v1202_v10 = vpop.f32.mrf.mxu3 }
 0x24e   :  { %1378 = vst.msk [vmem:[%s3270_s10 + $0x58] sm:$0xff] %vm66_vm0, %v1305_v35  ;;  %v635_v14 = vsel %vm634_vm13, %v1583_v2, %v631_v46  ;;  %1430 = vmatmul.msk.f32.gmra.mxu0 %vm66_vm0, %v835_v6  ;;  %1462 = vmatmul.msk.f32.gmra.mxu1 %vm66_vm0, %v835_v6 }
 0x24f   :  { %1077 = vst.msk [vmem:[%s3269_s8 + $0x60] sm:$0xff] %vm66_vm0, %v1006_v51  ;;  %v766_v26 = vmul.f32 %v635_v14, %v2728_v55  ;;  %1494 = vmatmul.msk.f32.gmra.mxu2 %vm66_vm0, %v835_v6 }
 0x250   :  { %1242 = vst.msk [vmem:[%s3268_s9 + $0xe0] sm:$0xff] %vm66_vm0, %v1202_v10 }
 0x251   :  { %v801_v4 = vmul.f32 %v2687_v54, %v766_v26 }
 0x252   :  { %v1307_v7 = vpop.f32.mrf.mxu2 }
 0x253   :  { %v1308_v41 = vadd.f32 %v2460_v37, %v1307_v7  ;;  %v1008_v0 = vpop.f32.mrf.mxu0  ;;  %v836_v55 = vadd.f32 %v2709_v59, %v801_v4 }
 0x254   :  { %v1157_v33 = vpop.f32.mrf.mxu1  ;;  %v1009_v49 = vadd.f32 %v2443_v61, %v1008_v0 }
 0x255   :  { %1227 = vst.msk [vmem:[%s3268_s9 + $0x68] sm:$0xff] %vm66_vm0, %v1157_v33  ;;  %v1205_v32 = vpop.f32.mrf.mxu3 }
 0x256   :  { %1379 = vst.msk [vmem:[%s3270_s10 + $0x60] sm:$0xff] %vm66_vm0, %v1308_v41  ;;  %1431 = vmatmul.msk.f32.gmra.mxu0 %vm66_vm0, %v836_v55  ;;  %1463 = vmatmul.msk.f32.gmra.mxu1 %vm66_vm0, %v836_v55 }
 0x257   :  { %1078 = vst.msk [vmem:[%s3269_s8 + $0x68] sm:$0xff] %vm66_vm0, %v1009_v49  ;;  %1495 = vmatmul.msk.f32.gmra.mxu2 %vm66_vm0, %v836_v55 }
 0x258   :  { %1243 = vst.msk [vmem:[%s3268_s9 + $0xe8] sm:$0xff] %vm66_vm0, %v1205_v32 }
 0x25a   :  { %v1310_v61 = vpop.f32.mrf.mxu2 }
 0x25b   :  { %v1311_v40 = vadd.f32 %v2460_v37, %v1310_v61 }
 0x25d   :  { %1380 = vst.msk [vmem:[%s3270_s10 + $0x68] sm:$0xff] %vm66_vm0, %v1311_v40  ;;  %v1208_v63 = vpop.f32.mrf.mxu3 }
 0x25e   :  { %1244 = vst.msk [vmem:[%s3268_s9 + $0xf0] sm:$0xff] %vm66_vm0, %v1208_v63 }
 0x265   :  { %v1211_v31 = vpop.f32.mrf.mxu3 }
 0x266   :  { %1245 = vst.msk [vmem:[%s3268_s9 + $0xf8] sm:$0xff] %vm66_vm0, %v1211_v31 }
 0x26d   :  { %v1343_v20 = vpop.f32.mrf.mxu3 }
 0x26e   :  { %v1344_v39 = vadd.f32 %v2460_v37, %v1343_v20 }
 0x270   :  { %1391 = vst.msk [vmem:[%s3270_s10 + $0xc0] sm:$0xff] %vm66_vm0, %v1344_v39 }
 0x275   :  { %v1346_v42 = vpop.f32.mrf.mxu3 }
 0x276   :  { %v1347_v16 = vadd.f32 %v3057_v60, %v1346_v42 }
 0x278   :  { %1392 = vst.msk [vmem:[%s3270_s10 + $0xc8] sm:$0xff] %vm66_vm0, %v1347_v16 }
 0x27d   :  { %v1349_v18 = vpop.f32.mrf.mxu3 }
 0x27e   :  { %v1350_v37 = vadd.f32 %v3057_v60, %v1349_v18 }
 0x280   :  { %1393 = vst.msk [vmem:[%s3270_s10 + $0xd0] sm:$0xff] %vm66_vm0, %v1350_v37 }
 0x285   :  { %v1352_v47 = vpop.f32.mrf.mxu3 }
 0x286   :  { %v1353_v1 = vadd.f32 %v3057_v60, %v1352_v47 }
 0x288   :  { %1394 = vst.msk [vmem:[%s3270_s10 + $0xd8] sm:$0xff] %vm66_vm0, %v1353_v1 }
 0x28b   :  { %v331_v52 = vpop.xlane.xlu1 %330 }
 0x28c   :  { %v383_v5 = vmul.f32 %v331_v52, %v1736_v34 }
 0x28d   :  { %v1355_v12 = vpop.f32.mrf.mxu3 }
 0x28e   :  { %v415_v23 = vadd.f32 1e-05, %v383_v5  ;;  %v1356_v21 = vadd.f32 %v3057_v60, %v1355_v12 }
 0x290   :  { %1584 = vrsqrt.f32 %v415_v23  ;;  %1395 = vst.msk [vmem:[%s3270_s10 + $0xe0] sm:$0xff] %vm66_vm0, %v1356_v21  ;;  %vm642_vm15 = vweird.f32 %v415_v23 }
 0x294   :  { %v334_v58 = vpop.xlane.xlu2 %333 }
 0x295   :  { %v384_v27 = vmul.f32 %v334_v58, %v1736_v34  ;;  %v1358_v28 = vpop.f32.mrf.mxu3 }
 0x296   :  { %v1585_v50 = vpop.eup %1584  ;;  %v1359_v29 = vadd.f32 %v3057_v60, %v1358_v28 }
 0x297   :  { %v637_v53 = vmul.f32 %v1585_v50, %v415_v23  ;;  %v416_v8 = vadd.f32 1e-05, %v384_v27  ;;  %vm643_vm14 = vweird.f32 %v1585_v50 }
 0x298   :  { %1396 = vst.msk [vmem:[%s3270_s10 + $0xe8] sm:$0xff] %vm66_vm0, %v1359_v29  ;;  %vm644_vm1 = vmor %vm642_vm15, %vm643_vm14 }
 0x299   :  { %v638_v2 = vmul.f32 %v1585_v50, %v637_v53  ;;  %1586 = vrsqrt.f32 %v416_v8  ;;  %vm652_vm3 = vweird.f32 %v416_v8 }
 0x29b   :  { %v639_v22 = vmul.f32 0.5, %v638_v2 }
 0x29c   :  { %v337_v17 = vpop.xlane.xlu0 %336 }
 0x29d   :  { %v640_v13 = vsub.f32 1.5, %v639_v22  ;;  %v1361_v44 = vpop.f32.mrf.mxu3  ;;  %v385_v56 = vmul.f32 %v337_v17, %v1736_v34 }
 0x29e   :  { %v1362_v36 = vadd.f32 %v3057_v60, %v1361_v44 }
 0x29f   :  { %v1587_v30 = vpop.eup %1586  ;;  %v641_v11 = vmul.f32 %v1585_v50, %v640_v13  ;;  %v417_v19 = vadd.f32 1e-05, %v385_v56 }
 0x2a0   :  { %v647_v9 = vmul.f32 %v1587_v30, %v416_v8  ;;  %1397 = vst.msk [vmem:[%s3270_s10 + $0xf0] sm:$0xff] %vm66_vm0, %v1362_v36  ;;  %vm653_vm2 = vweird.f32 %v1587_v30 }
 0x2a1   :  { %v645_v43 = vsel %vm644_vm1, %v1585_v50, %v641_v11  ;;  %1588 = vrsqrt.f32 %v417_v19  ;;  %vm654_vm4 = vmor %vm652_vm3, %vm653_vm2  ;;  %vm662_vm6 = vweird.f32 %v417_v19 }
 0x2a2   :  { %v648_v45 = vmul.f32 %v1587_v30, %v647_v9  ;;  %v1011_v25 = vpop.f32.mrf.mxu0  ;;  %v1160_v24 = vpop.f32.mrf.mxu1  ;;  %v767_v34 = vmul.f32 %v645_v43, %v2835_v62 }
 0x2a3   :  { %v1012_v35 = vadd.f32 %v3096_v38, %v1011_v25  ;;  %1228 = vst.msk [vmem:[%s3268_s9 + $0x70] sm:$0xff] %vm66_vm0, %v1160_v24 }
 0x2a4   :  { %v649_v48 = vmul.f32 0.5, %v648_v45  ;;  %v802_v57 = vmul.f32 %v2687_v54, %v767_v34 }
 0x2a5   :  { %1079 = vst.msk [vmem:[%s3269_s8 + $0x70] sm:$0xff] %vm66_vm0, %v1012_v35  ;;  %v1364_v62 = vpop.f32.mrf.mxu3 }
 0x2a6   :  { %v650_v46 = vsub.f32 1.5, %v649_v48  ;;  %v1365_v51 = vadd.f32 %v3057_v60, %v1364_v62  ;;  %v837_v6 = vadd.f32 %v2709_v59, %v802_v57 }
 0x2a7   :  { %v1589_v14 = vpop.eup %1588 }
 0x2a8   :  { %v651_v10 = vmul.f32 %v1587_v30, %v650_v46  ;;  %1398 = vst.msk [vmem:[%s3270_s10 + $0xf8] sm:$0xff] %vm66_vm0, %v1365_v51  ;;  %1432 = vmatmul.msk.f32.gmra.mxu0 %vm66_vm0, %v837_v6  ;;  %1464 = vmatmul.msk.f32.gmra.mxu1 %vm66_vm0, %v837_v6  ;;  %v657_v26 = vmul.f32 %v1589_v14, %v417_v19  ;;  %vm663_vm5 = vweird.f32 %v1589_v14 }
 0x2a9   :  { %v1313_v4 = vpop.f32.mrf.mxu2  ;;  %1496 = vmatmul.msk.f32.gmra.mxu2 %vm66_vm0, %v837_v6  ;;  %vm664_vm7 = vmor %vm662_vm6, %vm663_vm5 }
 0x2aa   :  { %v655_v7 = vsel %vm654_vm4, %v1587_v30, %v651_v10  ;;  %v1314_v41 = vadd.f32 %v3057_v60, %v1313_v4  ;;  %v658_v0 = vmul.f32 %v1589_v14, %v657_v26 }
 0x2ab   :  { %v1014_v33 = vpop.f32.mrf.mxu0  ;;  %v1163_v49 = vpop.f32.mrf.mxu1  ;;  %v768_v55 = vmul.f32 %v655_v7, %v2850_v15 }
 0x2ac   :  { %1381 = vst.msk [vmem:[%s3270_s10 + $0x70] sm:$0xff] %vm66_vm0, %v1314_v41  ;;  %v1015_v32 = vadd.f32 %v3096_v38, %v1014_v33  ;;  %v659_v61 = vmul.f32 0.5, %v658_v0 }
 0x2ad   :  { %1229 = vst.msk [vmem:[%s3268_s9 + $0x78] sm:$0xff] %vm66_vm0, %v1163_v49  ;;  %v803_v40 = vmul.f32 %v2687_v54, %v768_v55 }
 0x2ae   :  { %1080 = vst.msk [vmem:[%s3269_s8 + $0x78] sm:$0xff] %vm66_vm0, %v1015_v32  ;;  %v660_v15 = vsub.f32 1.5, %v659_v61 }
 0x2af   :  { %v838_v63 = vadd.f32 %v2709_v59, %v803_v40 }
 0x2b0   :  { %v661_v31 = vmul.f32 %v1589_v14, %v660_v15 }
 0x2b1   :  { %1433 = vmatmul.msk.f32.gmra.mxu0 %vm66_vm0, %v838_v63  ;;  %1465 = vmatmul.msk.f32.gmra.mxu1 %vm66_vm0, %v838_v63 }
 0x2b2   :  { %v1316_v20 = vpop.f32.mrf.mxu2  ;;  %1497 = vmatmul.msk.f32.gmra.mxu2 %vm66_vm0, %v838_v63  ;;  %v665_v39 = vsel %vm664_vm7, %v1589_v14, %v661_v31 }
 0x2b3   :  { %v1317_v42 = vadd.f32 %v3057_v60, %v1316_v20  ;;  %v1017_v16 = vpop.f32.mrf.mxu0  ;;  %v1166_v18 = vpop.f32.mrf.mxu1  ;;  %v769_v37 = vmul.f32 %v665_v39, %v2865_v3 }
 0x2b4   :  { %v1018_v47 = vadd.f32 %v3096_v38, %v1017_v16  ;;  %1230 = vst.msk [vmem:[%s3268_s9 + $0x80] sm:$0xff] %vm66_vm0, %v1166_v18 }
 0x2b5   :  { %1382 = vst.msk [vmem:[%s3270_s10 + $0x78] sm:$0xff] %vm66_vm0, %v1317_v42  ;;  %v804_v1 = vmul.f32 %v2687_v54, %v769_v37 }
 0x2b6   :  { %1081 = vst.msk [vmem:[%s3269_s8 + $0x80] sm:$0xff] %vm66_vm0, %v1018_v47 }
 0x2b7   :  { %v839_v3 = vadd.f32 %v2709_v59, %v804_v1 }
 0x2b9   :  { %1434 = vmatmul.msk.f32.gmra.mxu0 %vm66_vm0, %v839_v3  ;;  %1466 = vmatmul.msk.f32.gmra.mxu1 %vm66_vm0, %v839_v3 }
 0x2ba   :  { %v1319_v52 = vpop.f32.mrf.mxu2  ;;  %1498 = vmatmul.msk.f32.gmra.mxu2 %vm66_vm0, %v839_v3 }
 0x2bb   :  { %v1320_v5 = vadd.f32 %v3057_v60, %v1319_v52  ;;  %v1020_v12 = vpop.f32.mrf.mxu0  ;;  %v1169_v23 = vpop.f32.mrf.mxu1 }
 0x2bc   :  { %v1021_v54 = vadd.f32 %v3096_v38, %v1020_v12  ;;  %1231 = vst.msk [vmem:[%s3268_s9 + $0x88] sm:$0xff] %vm66_vm0, %v1169_v23 }
 0x2bd   :  { %1383 = vst.msk [vmem:[%s3270_s10 + $0x80] sm:$0xff] %vm66_vm0, %v1320_v5 }
 0x2be   :  { %1082 = vst.msk [vmem:[%s3269_s8 + $0x88] sm:$0xff] %vm66_vm0, %v1021_v54 }
 0x2c2   :  { %v1322_v59 = vpop.f32.mrf.mxu2 }
 0x2c3   :  { %v1323_v21 = vadd.f32 %v3057_v60, %v1322_v59  ;;  %v1023_v58 = vpop.f32.mrf.mxu0  ;;  %v1172_v27 = vpop.f32.mrf.mxu1 }
 0x2c4   :  { %v1024_v28 = vadd.f32 %v3096_v38, %v1023_v58  ;;  %1232 = vst.msk [vmem:[%s3268_s9 + $0x90] sm:$0xff] %vm66_vm0, %v1172_v27 }
 0x2c5   :  { %1384 = vst.msk [vmem:[%s3270_s10 + $0x88] sm:$0xff] %vm66_vm0, %v1323_v21 }
 0x2c6   :  { %1083 = vst.msk [vmem:[%s3269_s8 + $0x90] sm:$0xff] %vm66_vm0, %v1024_v28 }
 0x2ca   :  { %v1325_v50 = vpop.f32.mrf.mxu2 }
 0x2cb   :  { %v1326_v29 = vadd.f32 %v3057_v60, %v1325_v50  ;;  %v1026_v53 = vpop.f32.mrf.mxu0  ;;  %v1175_v8 = vpop.f32.mrf.mxu1 }
 0x2cc   :  { %v1027_v2 = vadd.f32 %v3096_v38, %v1026_v53  ;;  %1233 = vst.msk [vmem:[%s3268_s9 + $0x98] sm:$0xff] %vm66_vm0, %v1175_v8 }
 0x2cd   :  { %1385 = vst.msk [vmem:[%s3270_s10 + $0x90] sm:$0xff] %vm66_vm0, %v1326_v29 }
 0x2ce   :  { %1084 = vst.msk [vmem:[%s3269_s8 + $0x98] sm:$0xff] %vm66_vm0, %v1027_v2 }
 0x2d2   :  { %v1328_v22 = vpop.f32.mrf.mxu2 }
 0x2d3   :  { %v1329_v13 = vadd.f32 %v3057_v60, %v1328_v22  ;;  %v1029_v17 = vpop.f32.mrf.mxu0  ;;  %v1178_v44 = vpop.f32.mrf.mxu1 }
 0x2d4   :  { %v1030_v56 = vadd.f32 %v3096_v38, %v1029_v17  ;;  %1234 = vst.msk [vmem:[%s3268_s9 + $0xa0] sm:$0xff] %vm66_vm0, %v1178_v44 }
 0x2d5   :  { %1386 = vst.msk [vmem:[%s3270_s10 + $0x98] sm:$0xff] %vm66_vm0, %v1329_v13 }
 0x2d6   :  { %1085 = vst.msk [vmem:[%s3269_s8 + $0xa0] sm:$0xff] %vm66_vm0, %v1030_v56 }
 0x2da   :  { %v1331_v36 = vpop.f32.mrf.mxu2 }
 0x2db   :  { %v1332_v30 = vadd.f32 %v3057_v60, %v1331_v36 }
 0x2dd   :  { %1387 = vst.msk [vmem:[%s3270_s10 + $0xa0] sm:$0xff] %vm66_vm0, %v1332_v30 }
 0x325   :  { %v1032_v11 = vpop.f32.mrf.mxu0  ;;  %v1181_v9 = vpop.f32.mrf.mxu1 }
 0x326   :  { %v1033_v19 = vadd.f32 %v3096_v38, %v1032_v11  ;;  %1235 = vst.msk [vmem:[%s3268_s9 + $0xa8] sm:$0xff] %vm66_vm0, %v1181_v9 }
 0x328   :  { %1086 = vst.msk [vmem:[%s3269_s8 + $0xa8] sm:$0xff] %vm66_vm0, %v1033_v19 }
 0x32c   :  { %v1334_v43 = vpop.f32.mrf.mxu2 }
 0x32d   :  { %v1335_v45 = vadd.f32 %v3057_v60, %v1334_v43 }
 0x32e   :  { %v1035_v25 = vpop.f32.mrf.mxu0  ;;  %v1184_v24 = vpop.f32.mrf.mxu1 }
 0x32f   :  { %1388 = vst.msk [vmem:[%s3270_s10 + $0xa8] sm:$0xff] %vm66_vm0, %v1335_v45  ;;  %v1036_v34 = vadd.f32 %v3096_v38, %v1035_v25 }
 0x330   :  { %1236 = vst.msk [vmem:[%s3268_s9 + $0xb0] sm:$0xff] %vm66_vm0, %v1184_v24 }
 0x331   :  { %1087 = vst.msk [vmem:[%s3269_s8 + $0xb0] sm:$0xff] %vm66_vm0, %v1036_v34 }
 0x335   :  { %v1337_v35 = vpop.f32.mrf.mxu2 }
 0x336   :  { %v1338_v48 = vadd.f32 %v3057_v60, %v1337_v35  ;;  %v1038_v57 = vpop.f32.mrf.mxu0  ;;  %v1187_v62 = vpop.f32.mrf.mxu1 }
 0x337   :  { %v1039_v46 = vadd.f32 %v3096_v38, %v1038_v57  ;;  %1237 = vst.msk [vmem:[%s3268_s9 + $0xb8] sm:$0xff] %vm66_vm0, %v1187_v62 }
 0x338   :  { %1389 = vst.msk [vmem:[%s3270_s10 + $0xb0] sm:$0xff] %vm66_vm0, %v1338_v48 }
 0x339   :  { %1088 = vst.msk [vmem:[%s3269_s8 + $0xb8] sm:$0xff] %vm66_vm0, %v1039_v46 }
 0x33d   :  { %v1340_v51 = vpop.f32.mrf.mxu2 }
 0x33e   :  { %v1341_v6 = vadd.f32 %v3057_v60, %v1340_v51 }
 0x340   :  { %1390 = vst.msk [vmem:[%s3270_s10 + $0xb8] sm:$0xff] %vm66_vm0, %v1341_v6 }

</bundles_post_ra>
